<compile_context>
chip_gen: v7x
topology: tpu7x:2x2x1
jax: 0.10.0
libtpu: 0.0.40
codegen_flags: <defaults>
</compile_context>

<pallas_src>
import jax
import jax.numpy as jnp
from jax.experimental import pallas as pl
from jax.experimental.pallas import tpu as pltpu


def _orthogonal(key, out_dim, in_dim, dtype=jnp.float32):
    """Deterministic orthogonal init (rows orthonormal when out_dim <= in_dim),
    mimicking torch.nn.init.orthogonal_ semantics (not bit-exact RNG)."""
    n, m = max(out_dim, in_dim), min(out_dim, in_dim)
    a = jax.random.normal(key, (n, m), dtype=jnp.float32)
    q, r = jnp.linalg.qr(a)
    d = jnp.sign(jnp.diag(r))
    q = q * d[None, :]
    w = q.T if out_dim <= in_dim else q          # (out_dim, in_dim)
    return w.astype(dtype)


def tied_ae_kernel(x_ref, w1t_ref, w1_ref, b1_ref, w2t_ref, w2_ref, b2_ref,
                   db1_ref, db2_ref, o_ref):
    """Fused encoder + tied decoder for one batch tile.

    x_ref   : (TB, D)   flattened input tile
    w1t_ref : (D, L1)   enc_linear_1 weight, pre-transposed (in x out)
    w1_ref  : (L1, D)   enc_linear_1 weight (out x in), reused by the decoder
    b1_ref  : (1, L1)
    w2t_ref : (L1, Z)   hidden_linear weight, pre-transposed
    w2_ref  : (Z, L1)   hidden_linear weight, reused by the decoder
    b2_ref  : (1, Z)
    db1_ref : (1, L1)   decoder bias (reversed: corresponds to hidden_linear)
    db2_ref : (1, D)    decoder bias (reversed: corresponds to enc_linear_1)
    o_ref   : (TB, D)   reconstructed flattened output tile
    """
    mm_dtype = w1t_ref.dtype                     # f32, or bf16 if wrapper opted in

    x = x_ref[...].astype(mm_dtype)

    # --- encoder ---
    h1 = jnp.dot(x, w1t_ref[...], preferred_element_type=jnp.float32) + b1_ref[...]
    h1 = jnp.maximum(h1, 0.0)                    # ReLU (f32 epilogue on VPU)

    z = jnp.dot(h1.astype(mm_dtype), w2t_ref[...],
                preferred_element_type=jnp.float32) + b2_ref[...]
    z = jnp.maximum(z, 0.0)                      # ReLU

    # --- tied decoder ---
    # F.linear(z, W2.T, db1) == z @ W2 + db1
    d1 = jnp.dot(z.astype(mm_dtype), w2_ref[...],
                 preferred_element_type=jnp.float32) + db1_ref[...]
    d1 = jnp.maximum(d1, 0.0)                    # ReLU (i < last)

    # F.linear(d1, W1.T, db2) == d1 @ W1 + db2 ; out_activation = Identity
    y = jnp.dot(d1.astype(mm_dtype), w1_ref[...],
                preferred_element_type=jnp.float32) + db2_ref[...]
    o_ref[...] = y.astype(o_ref.dtype)


def _round_up(a, m):
    return (a + m - 1) // m * m


def tied_autoencoder_forward(x_nchw, w1, b1, w2, b2, db1, db2, *,
                             batch_tile=512, use_bf16_matmul=False):
    """Flatten NCHW input, run the fused Pallas kernel tiled over the batch,
    reshape back to NCHW."""
    B, C, H, W = x_nchw.shape
    D = C * H * W
    L1 = w1.shape[0]
    Z = w2.shape[0]

    x_flat = x_nchw.reshape(B, D)                # torch.nn.Flatten (row-major)

    # Batch tile: multiple of 8 (f32 sublane), capped at batch_tile.
    TB = min(batch_tile, _round_up(B, 8))
    grid = (pl.cdiv(B, TB),)                     # ragged edge block handled by Pallas

    # Pre-transposed weight copies: every in-kernel matmul is plain (M,K)@(K,N).
    w1_t = w1.T                                  # (D, L1)
    w2_t = w2.T                                  # (L1, Z)

    mm_dtype = jnp.bfloat16 if use_bf16_matmul else jnp.float32
    mm_bytes = 2 if use_bf16_matmul else 4

    def const_spec(shape):
        return pl.BlockSpec(shape, lambda i: (0,) * len(shape))

    flops = 2 * B * 2 * (D * L1 + L1 * Z)        # four matmuls, tied weights
    bytes_accessed = (4 * 2 * B * D                         # x in + y out (f32)
                      + mm_bytes * 2 * (D * L1 + L1 * Z)    # both weight copies
                      + 4 * (2 * L1 + Z + D))               # biases

    out_flat = pl.pallas_call(
        tied_ae_kernel,
        out_shape=jax.ShapeDtypeStruct((B, D), jnp.float32),
        grid=grid,
        in_specs=[
            pl.BlockSpec((TB, D), lambda i: (i, 0)),   # x: streamed per tile
            const_spec((D, L1)),                       # w1_t (resident)
            const_spec((L1, D)),                       # w1   (resident)
            const_spec((1, L1)),                       # b1
            const_spec((L1, Z)),                       # w2_t
            const_spec((Z, L1)),                       # w2
            const_spec((1, Z)),                        # b2
            const_spec((1, L1)),                       # db1
            const_spec((1, D)),                        # db2
        ],
        out_specs=pl.BlockSpec((TB, D), lambda i: (i, 0)),
        compiler_params=pltpu.CompilerParams(
            dimension_semantics=("parallel",),         # 2 TCs on v7x
            vmem_limit_bytes=32 * 1024 * 1024,         # covers v5e's 16 MiB default
        ),
        cost_estimate=pl.CostEstimate(flops=flops, transcendentals=0,
                                      bytes_accessed=bytes_accessed),
    )(x_flat,
      w1_t.astype(mm_dtype), w1.astype(mm_dtype), b1.reshape(1, -1),
      w2_t.astype(mm_dtype), w2.astype(mm_dtype), b2.reshape(1, -1),
      db1.reshape(1, -1), db2.reshape(1, -1))

    return out_flat.reshape(B, C, H, W)          # reshape(-1, *input_dim)


def _reference_forward(x_nchw, w1, b1, w2, b2, db1, db2):
    B, C, H, W = x_nchw.shape
    x = x_nchw.reshape(B, -1)
    h1 = jnp.maximum(x @ w1.T + b1, 0.0)
    z = jnp.maximum(h1 @ w2.T + b2, 0.0)
    d1 = jnp.maximum(z @ w2 + db1, 0.0)
    y = d1 @ w1 + db2
    return y.reshape(B, C, H, W)


if __name__ == "__main__":
    # shapes: batch=2, channels=4, spatial=16x16 -> flat dim 1024
    B, C, H, W = 2, 4, 16, 16
    D = C * H * W          # 1024
    L1 = 256               # layers_dim[0]
    Z = 128                # latent_dim

    key = jax.random.PRNGKey(0)
    kx, kw1, kw2 = jax.random.split(key, 3)

    x = jax.random.normal(kx, (B, C, H, W), dtype=jnp.float32)

    # Linear weights: orthogonal init (as in __init_weights), zero biases.
    w1 = _orthogonal(kw1, L1, D)          # enc_linear_1: (256, 1024)
    b1 = jnp.zeros((L1,), jnp.float32)
    w2 = _orthogonal(kw2, Z, L1)          # hidden_linear: (128, 256)
    b2 = jnp.zeros((Z,), jnp.float32)

    # decoder_biases (reversed): first corresponds to hidden_linear (dim L1),
    # second to enc_linear_1 (dim D); both initialized to zeros.
    db1 = jnp.zeros((L1,), jnp.float32)
    db2 = jnp.zeros((D,), jnp.float32)

    y_ref = _reference_forward(x, w1, b1, w2, b2, db1, db2)

    # f32 path (strict tolerance)
    y = tied_autoencoder_forward(x, w1, b1, w2, b2, db1, db2)
    y = jax.block_until_ready(y)
    assert y.shape == (B, C, H, W)
    assert jnp.allclose(y, y_ref, atol=1e-4, rtol=1e-4), "f32 mismatch vs reference"

    # bf16-MXU path (f32 accumulation / epilogue) - loose tolerance sanity check
    y16 = tied_autoencoder_forward(x, w1, b1, w2, b2, db1, db2,
                                   use_bf16_matmul=True)
    y16 = jax.block_until_ready(y16)
    assert jnp.all(jnp.isfinite(y16))
    assert jnp.allclose(y16, y_ref, atol=1e-1, rtol=1e-1), "bf16 mismatch vs reference"

    # TODO(synk): fit/evaluate/orthogonal_regularization are training-loop
    # utilities, not part of the forward pass, and are intentionally not ported.
    print("KERNEL_OK")
</pallas_src>

<mosaic_0001>
module attributes {stable_mosaic.version = 11 : i64} {
  func.func @tied_ae_kernel(%arg0: i32, %arg1: memref<8x1024xf32, #tpu.memory_space<vmem>>, %arg2: memref<1024x256xf32, #tpu.memory_space<vmem>>, %arg3: memref<256x1024xf32, #tpu.memory_space<vmem>>, %arg4: memref<1x256xf32, #tpu.memory_space<vmem>>, %arg5: memref<256x128xf32, #tpu.memory_space<vmem>>, %arg6: memref<128x256xf32, #tpu.memory_space<vmem>>, %arg7: memref<1x128xf32, #tpu.memory_space<vmem>>, %arg8: memref<1x256xf32, #tpu.memory_space<vmem>>, %arg9: memref<1x1024xf32, #tpu.memory_space<vmem>>, %arg10: memref<8x1024xf32, #tpu.memory_space<vmem>>) attributes {dimension_semantics = [#tpu.dimension_semantics<parallel>], iteration_bounds = array<i64: 1>, scalar_prefetch = 0 : i64, scratch_operands = 0 : i64, tpu.core_type = #tpu.core_type<tc>, window_params = [{transform_indices = @transform_0, window_bounds = array<i64: 8, 1024>}, {pipeline_mode = #tpu.pipeline_mode<synchronous>, transform_indices = @transform_1, window_bounds = array<i64: 1024, 256>}, {pipeline_mode = #tpu.pipeline_mode<synchronous>, transform_indices = @transform_2, window_bounds = array<i64: 256, 1024>}, {pipeline_mode = #tpu.pipeline_mode<synchronous>, transform_indices = @transform_3, window_bounds = array<i64: 1, 256>}, {pipeline_mode = #tpu.pipeline_mode<synchronous>, transform_indices = @transform_4, window_bounds = array<i64: 256, 128>}, {pipeline_mode = #tpu.pipeline_mode<synchronous>, transform_indices = @transform_5, window_bounds = array<i64: 128, 256>}, {pipeline_mode = #tpu.pipeline_mode<synchronous>, transform_indices = @transform_6, window_bounds = array<i64: 1, 128>}, {pipeline_mode = #tpu.pipeline_mode<synchronous>, transform_indices = @transform_7, window_bounds = array<i64: 1, 256>}, {pipeline_mode = #tpu.pipeline_mode<synchronous>, transform_indices = @transform_8, window_bounds = array<i64: 1, 1024>}, {transform_indices = @transform_9, window_bounds = array<i64: 8, 1024>}]} {
    %c0 = arith.constant 0 : index
    %c0_0 = arith.constant 0 : index
    %0 = vector.load %arg1[%c0, %c0_0] : memref<8x1024xf32, #tpu.memory_space<vmem>>, vector<8x1024xf32>
    %c0_1 = arith.constant 0 : index
    %c0_2 = arith.constant 0 : index
    %1 = vector.load %arg2[%c0_1, %c0_2] : memref<1024x256xf32, #tpu.memory_space<vmem>>, vector<1024x256xf32>
    %cst = arith.constant dense<0.000000e+00> : vector<8x256xf32>
    %2 = tpu.matmul %0, %1, %cst {dimension_numbers = #tpu.dot_dimension_numbers<[1], [0], [0], [1], [0, 0, 1, 1], [], []>} : vector<8x1024xf32>, vector<1024x256xf32>, vector<8x256xf32> -> vector<8x256xf32>
    %c0_3 = arith.constant 0 : index
    %c0_4 = arith.constant 0 : index
    %3 = vector.load %arg4[%c0_3, %c0_4] : memref<1x256xf32, #tpu.memory_space<vmem>>, vector<1x256xf32>
    %4 = vector.broadcast %3 : vector<1x256xf32> to vector<8x256xf32>
    %5 = arith.addf %2, %4 : vector<8x256xf32>
    %cst_5 = arith.constant 0.000000e+00 : f32
    %6 = vector.broadcast %cst_5 : f32 to vector<8x256xf32>
    %7 = arith.maximumf %5, %6 : vector<8x256xf32>
    %c0_6 = arith.constant 0 : index
    %c0_7 = arith.constant 0 : index
    %8 = vector.load %arg5[%c0_6, %c0_7] : memref<256x128xf32, #tpu.memory_space<vmem>>, vector<256x128xf32>
    %cst_8 = arith.constant dense<0.000000e+00> : vector<8x128xf32>
    %9 = tpu.matmul %7, %8, %cst_8 {dimension_numbers = #tpu.dot_dimension_numbers<[1], [0], [0], [1], [0, 0, 1, 1], [], []>} : vector<8x256xf32>, vector<256x128xf32>, vector<8x128xf32> -> vector<8x128xf32>
    %c0_9 = arith.constant 0 : index
    %c0_10 = arith.constant 0 : index
    %10 = vector.load %arg7[%c0_9, %c0_10] : memref<1x128xf32, #tpu.memory_space<vmem>>, vector<1x128xf32>
    %11 = vector.broadcast %10 : vector<1x128xf32> to vector<8x128xf32>
    %12 = arith.addf %9, %11 : vector<8x128xf32>
    %cst_11 = arith.constant 0.000000e+00 : f32
    %13 = vector.broadcast %cst_11 : f32 to vector<8x128xf32>
    %14 = arith.maximumf %12, %13 : vector<8x128xf32>
    %c0_12 = arith.constant 0 : index
    %c0_13 = arith.constant 0 : index
    %15 = vector.load %arg6[%c0_12, %c0_13] : memref<128x256xf32, #tpu.memory_space<vmem>>, vector<128x256xf32>
    %cst_14 = arith.constant dense<0.000000e+00> : vector<8x256xf32>
    %16 = tpu.matmul %14, %15, %cst_14 {dimension_numbers = #tpu.dot_dimension_numbers<[1], [0], [0], [1], [0, 0, 1, 1], [], []>} : vector<8x128xf32>, vector<128x256xf32>, vector<8x256xf32> -> vector<8x256xf32>
    %c0_15 = arith.constant 0 : index
    %c0_16 = arith.constant 0 : index
    %17 = vector.load %arg8[%c0_15, %c0_16] : memref<1x256xf32, #tpu.memory_space<vmem>>, vector<1x256xf32>
    %18 = vector.broadcast %17 : vector<1x256xf32> to vector<8x256xf32>
    %19 = arith.addf %16, %18 : vector<8x256xf32>
    %cst_17 = arith.constant 0.000000e+00 : f32
    %20 = vector.broadcast %cst_17 : f32 to vector<8x256xf32>
    %21 = arith.maximumf %19, %20 : vector<8x256xf32>
    %c0_18 = arith.constant 0 : index
    %c0_19 = arith.constant 0 : index
    %22 = vector.load %arg3[%c0_18, %c0_19] : memref<256x1024xf32, #tpu.memory_space<vmem>>, vector<256x1024xf32>
    %cst_20 = arith.constant dense<0.000000e+00> : vector<8x1024xf32>
    %23 = tpu.matmul %21, %22, %cst_20 {dimension_numbers = #tpu.dot_dimension_numbers<[1], [0], [0], [1], [0, 0, 1, 1], [], []>} : vector<8x256xf32>, vector<256x1024xf32>, vector<8x1024xf32> -> vector<8x1024xf32>
    %c0_21 = arith.constant 0 : index
    %c0_22 = arith.constant 0 : index
    %24 = vector.load %arg9[%c0_21, %c0_22] : memref<1x1024xf32, #tpu.memory_space<vmem>>, vector<1x1024xf32>
    %25 = vector.broadcast %24 : vector<1x1024xf32> to vector<8x1024xf32>
    %26 = arith.addf %23, %25 : vector<8x1024xf32>
    %c0_23 = arith.constant 0 : index
    %c0_24 = arith.constant 0 : index
    %27 = vector.load %arg10[%c0_23, %c0_24] : memref<8x1024xf32, #tpu.memory_space<vmem>>, vector<8x1024xf32>
    tpu.vector_store %arg10[%c0_23, %c0_24], %26 {strides = array<i32>} : memref<8x1024xf32, #tpu.memory_space<vmem>>, vector<8x1024xf32>,
    return
  }
  func.func @transform_0(%arg0: i32) -> (i32, i32) {
    %c0_i32 = arith.constant 0 : i32
    %c0_i32_0 = arith.constant 0 : i32
    return %arg0, %c0_i32 : i32, i32
  }
  func.func @transform_1(%arg0: i32) -> (i32, i32) {
    %c0_i32 = arith.constant 0 : i32
    %c0_i32_0 = arith.constant 0 : i32
    %c0_i32_1 = arith.constant 0 : i32
    return %c0_i32, %c0_i32_0 : i32, i32
  }
  func.func @transform_2(%arg0: i32) -> (i32, i32) {
    %c0_i32 = arith.constant 0 : i32
    %c0_i32_0 = arith.constant 0 : i32
    %c0_i32_1 = arith.constant 0 : i32
    return %c0_i32, %c0_i32_0 : i32, i32
  }
  func.func @transform_3(%arg0: i32) -> (i32, i32) {
    %c0_i32 = arith.constant 0 : i32
    %c0_i32_0 = arith.constant 0 : i32
    %c0_i32_1 = arith.constant 0 : i32
    return %c0_i32, %c0_i32_0 : i32, i32
  }
  func.func @transform_4(%arg0: i32) -> (i32, i32) {
    %c0_i32 = arith.constant 0 : i32
    %c0_i32_0 = arith.constant 0 : i32
    %c0_i32_1 = arith.constant 0 : i32
    return %c0_i32, %c0_i32_0 : i32, i32
  }
  func.func @transform_5(%arg0: i32) -> (i32, i32) {
    %c0_i32 = arith.constant 0 : i32
    %c0_i32_0 = arith.constant 0 : i32
    %c0_i32_1 = arith.constant 0 : i32
    return %c0_i32, %c0_i32_0 : i32, i32
  }
  func.func @transform_6(%arg0: i32) -> (i32, i32) {
    %c0_i32 = arith.constant 0 : i32
    %c0_i32_0 = arith.constant 0 : i32
    %c0_i32_1 = arith.constant 0 : i32
    return %c0_i32, %c0_i32_0 : i32, i32
  }
  func.func @transform_7(%arg0: i32) -> (i32, i32) {
    %c0_i32 = arith.constant 0 : i32
    %c0_i32_0 = arith.constant 0 : i32
    %c0_i32_1 = arith.constant 0 : i32
    return %c0_i32, %c0_i32_0 : i32, i32
  }
  func.func @transform_8(%arg0: i32) -> (i32, i32) {
    %c0_i32 = arith.constant 0 : i32
    %c0_i32_0 = arith.constant 0 : i32
    %c0_i32_1 = arith.constant 0 : i32
    return %c0_i32, %c0_i32_0 : i32, i32
  }
  func.func @transform_9(%arg0: i32) -> (i32, i32) {
    %c0_i32 = arith.constant 0 : i32
    %c0_i32_0 = arith.constant 0 : i32
    return %arg0, %c0_i32 : i32, i32
  }
}

</mosaic_0001>

<bundles_post_ra>
// kernel: tpu_custom_call.1
= control target key start
LH: loop header
LB: loop body
LE: loop exit
PB: predicated region body
PF: predicated region fallthrough
CT: control target
= control target key end

     0   :  { %14 = vsyncpa [#allocation3], 0  ;;  %s2727_s0 = inlined_call_operand.hbm [shape: f32[2,1024], index: 0, kind: input, shape index: {}]   ;;  %s2728_s1 = inlined_call_operand.hbm [shape: f32[1024,256], index: 1, kind: input, shape index: {}]   ;;  %s2729_s2 = inlined_call_operand.hbm [shape: f32[256,1024], index: 2, kind: input, shape index: {}]   ;;  %s2730_s3 = inlined_call_operand.vmem [shape: f32[1,256], index: 3, kind: input, shape index: {}]   ;;  %s2731_s4 = inlined_call_operand.hbm [shape: f32[256,128], index: 4, kind: input, shape index: {}]   ;;  %s2732_s5 = inlined_call_operand.hbm [shape: f32[128,256], index: 5, kind: input, shape index: {}]   ;;  %s2733_s6 = inlined_call_operand.vmem [shape: f32[1,128], index: 6, kind: input, shape index: {}]   ;;  %s2734_s7 = inlined_call_operand.vmem [shape: f32[1,256], index: 7, kind: input, shape index: {}]   ;;  %s2735_s8 = inlined_call_operand.vmem [shape: f32[1,1024], index: 8, kind: input, shape index: {}]   ;;  %s2736_s9 = inlined_call_operand.hbm [shape: f32[2,1024], index: 9, kind: output, shape index: {}]  }
   0x1   :  { %15 = vsyncpa [#allocation6], 0 }
   0x2   :  { %16 = vsyncpa [#allocation9], 0 }
   0x3   :  { %17 = vsyncpa [#allocation4], 0 }
   0x4   :  { %22 = vsyncadd [#allocation3], 768  ;;  %s2461_s30 = smov [#allocation5]   ;;  %s2462_s11 = smov [#allocation8]  }
   0x5   :  { %s35_s10 = sshll.u32 %s2461_s30, 4  ;;  %s61_s12 = sshll.u32 %s2462_s11, 4  ;;  %s36_s10 = int_to_ptr.vmem [resolvable:$true] %s35_s10  ;;  %s2525_s12 = int_to_ptr.vmem [resolvable:$true] %s61_s12 }
   0x6   :  { %s2321_s15 = scalar_lea.hbm %s2728_s1, 32768 }
   0x7   :  { %p2322_p0 = scmp.ne.s32.totalorder %s2728_s1, %s2321_s15  ;;  %p2325_p1 = scmp.lt.u32.totalorder %s2321_s15, %s2728_s1 }
   0x9   :  { %p2327_p2 = pnand %p2325_p1, %p2322_p0 }
   0xb   :  { %2330 = shalt.err (!%p2327_p2)
}
   0xc   :  { %s2331_s20 = scalar_lea.vmem %s36_s10, 32768  ;;  %p2336_p4 = scmp.lt.s32.totalorder %s36_s10, %s36_s10 }
   0xd   :  { %p2332_p3 = scmp.ne.s32.totalorder %s36_s10, %s2331_s20  ;;  %p2337_p5 = scmp.lt.s32.totalorder %s2331_s20, %s2331_s20 }
   0xf   :  { %p2338_p6 = por %p2337_p5, %p2336_p4 }
  0x11   :  { %p2339_p7 = pnand %p2338_p6, %p2332_p3 }
  0x13   :  { %2342 = shalt.err (!%p2339_p7)
}
  0x14   :  { %s2463_s21 = smov 256   ;;  %s2464_s22 = smov 16  }
  0x15   :  { %41 = dma.hbm_to_vmem [thread:$0]  %s2728_s1, 32768, %s36_s10, [#allocation6], %s2463_s21, %s2463_s21, %s2464_s22  }
  0x16   :  { %s2343_s27 = scalar_lea.hbm %s2731_s4, 4096 }
  0x17   :  { %p2344_p8 = scmp.ne.s32.totalorder %s2731_s4, %s2343_s27  ;;  %p2347_p9 = scmp.lt.u32.totalorder %s2343_s27, %s2731_s4 }
  0x19   :  { %p2349_p10 = pnand %p2347_p9, %p2344_p8 }
  0x1b   :  { %2352 = shalt.err (!%p2349_p10)
}
  0x1c   :  { %s2353_s13 = scalar_lea.vmem %s2525_s12, 4096  ;;  %p2358_p12 = scmp.lt.s32.totalorder %s2525_s12, %s2525_s12 }
  0x1d   :  { %p2354_p11 = scmp.ne.s32.totalorder %s2525_s12, %s2353_s13  ;;  %p2359_p13 = scmp.lt.s32.totalorder %s2353_s13, %s2353_s13 }
  0x1f   :  { %p2360_p0 = por %p2359_p13, %p2358_p12 }
  0x21   :  { %p2361_p1 = pnand %p2360_p0, %p2354_p11 }
  0x23   :  { %2364 = shalt.err (!%p2361_p1)
}
  0x24   :  { %s2465_s1 = smov 128   ;;  %s2466_s10 = smov 8  }
  0x25   :  { %67 = dma.hbm_to_vmem [thread:$0]  %s2731_s4, 4096, %s2525_s12, [#allocation9], %s2465_s1, %s2465_s1, %s2466_s10  }
  0x26   :  { %s2467_s16 = smov [#allocation2]   ;;  %s2468_s18 = smov [#allocation7]  }
  0x27   :  { %s23_s17 = sshll.u32 %s2467_s16, 4  ;;  %s47_s19 = sshll.u32 %s2468_s18, 4  ;;  %s24_s17 = int_to_ptr.vmem [resolvable:$true] %s23_s17  ;;  %s2559_s19 = int_to_ptr.vmem [resolvable:$true] %s47_s19 }
  0x28   :  { %s2365_s24 = scalar_lea.hbm %s2727_s0, 256 }
  0x29   :  { %p2366_p2 = scmp.ne.s32.totalorder %s2727_s0, %s2365_s24  ;;  %p2369_p3 = scmp.lt.u32.totalorder %s2365_s24, %s2727_s0 }
  0x2b   :  { %p2371_p4 = pnand %p2369_p3, %p2366_p2 }
  0x2d   :  { %2374 = shalt.err (!%p2371_p4)
}
  0x2e   :  { %s2375_s4 = scalar_lea.vmem %s24_s17, 256  ;;  %s2379_s12 = scalar_lea.vmem %s24_s17, 1024 }
  0x2f   :  { %p2376_p5 = scmp.ne.s32.totalorder %s24_s17, %s2375_s4  ;;  %p2380_p6 = scmp.lt.s32.totalorder %s24_s17, %s24_s17 }
  0x30   :  { %p2381_p7 = scmp.lt.s32.totalorder %s2379_s12, %s2375_s4 }
  0x32   :  { %p2382_p8 = por %p2381_p7, %p2380_p6 }
  0x34   :  { %p2383_p9 = pnand %p2382_p8, %p2376_p5 }
  0x36   :  { %2386 = shalt.err (!%p2383_p9)
}
  0x37   :  { %29 = dma.hbm_to_vmem [thread:$0]  %s2727_s0, 256, %s24_s17, [#allocation3], %s2463_s21, %s2463_s21, %s2464_s22  }
  0x38   :  { %s2387_s1 = scalar_lea.hbm %s2729_s2, 32768 }
  0x39   :  { %p2388_p10 = scmp.ne.s32.totalorder %s2729_s2, %s2387_s1  ;;  %p2391_p11 = scmp.lt.u32.totalorder %s2387_s1, %s2729_s2 }
  0x3b   :  { %p2393_p12 = pnand %p2391_p11, %p2388_p10 }
  0x3d   :  { %2396 = shalt.err (!%p2393_p12)
}
  0x3e   :  { %s2397_s18 = scalar_lea.vmem %s2559_s19, 32768  ;;  %p2402_p0 = scmp.lt.s32.totalorder %s2559_s19, %s2559_s19 }
  0x3f   :  { %p2398_p13 = scmp.ne.s32.totalorder %s2559_s19, %s2397_s18  ;;  %p2403_p1 = scmp.lt.s32.totalorder %s2397_s18, %s2397_s18 }
  0x41   :  { %p2404_p2 = por %p2403_p1, %p2402_p0 }
  0x43   :  { %p2405_p3 = pnand %p2404_p2, %p2398_p13 }
  0x45   :  { %2408 = shalt.err (!%p2405_p3)
}
  0x46   :  { %s2469_s0 = smov 1024   ;;  %s2470_s17 = smov 64  }
  0x47   :  { %53 = dma.hbm_to_vmem [thread:$0]  %s2729_s2, 32768, %s2559_s19, [#allocation6], %s2469_s0, %s2469_s0, %s2470_s17  }
  0x48   :  { %s2471_s24 = smov [#allocation10]   ;;  %s2409_s28 = scalar_lea.hbm %s2732_s5, 4096 }
  0x49   :  { %s73_s25 = sshll.u32 %s2471_s24, 4  ;;  %p2410_p4 = scmp.ne.s32.totalorder %s2732_s5, %s2409_s28  ;;  %s74_s25 = int_to_ptr.vmem [resolvable:$true] %s73_s25 }
  0x4a   :  { %p2413_p5 = scmp.lt.u32.totalorder %s2409_s28, %s2732_s5 }
  0x4c   :  { %p2415_p6 = pnand %p2413_p5, %p2410_p4 }
  0x4e   :  { %2418 = shalt.err (!%p2415_p6)
}
  0x4f   :  { %s2419_s11 = scalar_lea.vmem %s74_s25, 4096  ;;  %p2424_p8 = scmp.lt.s32.totalorder %s74_s25, %s74_s25 }
  0x50   :  { %p2420_p7 = scmp.ne.s32.totalorder %s74_s25, %s2419_s11  ;;  %p2425_p9 = scmp.lt.s32.totalorder %s2419_s11, %s2419_s11 }
  0x52   :  { %p2426_p10 = por %p2425_p9, %p2424_p8 }
  0x54   :  { %p2427_p11 = pnand %p2426_p10, %p2420_p7 }
  0x56   :  { %2430 = shalt.err (!%p2427_p11)
}
  0x57   :  { %79 = dma.hbm_to_vmem [thread:$0]  %s2732_s5, 4096, %s74_s25, [#allocation9], %s2463_s21, %s2463_s21, %s2464_s22  }
  0x58   :  { %2453 = dma.done.wait [#allocation3], 1024  }
  0x59   :  { %2454 = vsyncadd [#allocation3], 4294966272 }
  0x5a   :  { %2455 = dma.done.wait [#allocation6], 65536  }
  0x5b   :  { %2456 = vsyncadd [#allocation6], 4294901760 }
  0x5c   :  { %2457 = dma.done.wait [#allocation9], 8192  }
  0x5d   :  { %2458 = vsyncadd [#allocation9], 4294959104  ;;  %v110_v0 = vld [vmem:[#allocation5 + $0x8] sm:$0xff]  ;;  %v112_v1 = vld [vmem:[#allocation5 + $0x18] sm:$0xff]  ;;  %v367_v26 = vlaneseq  ;;  %v2472_v27 = vmov 1983009808  }
  0x5e   :  { %v109_v2 = vld [vmem:[#allocation5] sm:$0xff]  ;;  %v1711_v3 = vpack.c.bf16 %v112_v1, %v110_v0  ;;  %v111_v4 = vld [vmem:[#allocation5 + $0x10] sm:$0xff]  ;;  %v114_v5 = vld [vmem:[#allocation5 + $0x28] sm:$0xff]  ;;  %v390_v28 = vunpack.c.l.s4 %v2472_v27 }
  0x5f   :  { %v116_v6 = vld [vmem:[#allocation5 + $0x38] sm:$0xff]  ;;  %v1713_v7 = vpack.c.bf16 %v111_v4, %v109_v2  ;;  %v113_v9 = vld [vmem:[#allocation5 + $0x20] sm:$0xff]  ;;  %v115_v10 = vld [vmem:[#allocation5 + $0x30] sm:$0xff]  ;;  %v2608_v35 = vshrl.u32 %v367_v26, 7 }
  0x60   :  { %v1715_v8 = vpack.c.bf16 %v116_v6, %v114_v5  ;;  %v118_v11 = vld [vmem:[#allocation5 + $0x48] sm:$0xff]  ;;  %1712 = vmatprep.subr.bf16.mxu0 %v1711_v3  ;;  %v120_v12 = vld [vmem:[#allocation5 + $0x58] sm:$0xff]  ;;  %v1717_v13 = vpack.c.bf16 %v115_v10, %v113_v9  ;;  %v117_v15 = vld [vmem:[#allocation5 + $0x40] sm:$0xff]  ;;  %v391_v36 = vunpack.c.0.s8 %v390_v28 }
  0x61   :  { %1714 = vmatpush1.bf16.msra.mxu0 %v1713_v7  ;;  %v1719_v14 = vpack.c.bf16 %v120_v12, %v118_v11  ;;  %v119_v16 = vld [vmem:[#allocation5 + $0x50] sm:$0xff]  ;;  %v122_v17 = vld [vmem:[#allocation5 + $0x68] sm:$0xff]  ;;  %v124_v18 = vld [vmem:[#allocation5 + $0x78] sm:$0xff] }
  0x62   :  { %1716 = vmatprep.subr.bf16.mxu0 %v1715_v8  ;;  %v1721_v19 = vpack.c.bf16 %v119_v16, %v117_v15  ;;  %v1723_v20 = vpack.c.bf16 %v124_v18, %v122_v17  ;;  %v121_v21 = vld [vmem:[#allocation5 + $0x60] sm:$0xff]  ;;  %v123_v22 = vld [vmem:[#allocation5 + $0x70] sm:$0xff]  ;;  %v126_v23 = vld [vmem:[#allocation5 + $0x88] sm:$0xff]  ;;  %v2611_v46 = vsub.s32 %v391_v36, %v2608_v35 }
  0x63   :  { %v128_v24 = vld [vmem:[#allocation5 + $0x98] sm:$0xff]  ;;  %v1725_v25 = vpack.c.bf16 %v123_v22, %v121_v21  ;;  %v125_v30 = vld [vmem:[#allocation5 + $0x80] sm:$0xff]  ;;  %v127_v31 = vld [vmem:[#allocation5 + $0x90] sm:$0xff] }
  0x64   :  { %v1727_v29 = vpack.c.bf16 %v128_v24, %v126_v23  ;;  %v130_v32 = vld [vmem:[#allocation5 + $0xa8] sm:$0xff]  ;;  %v132_v33 = vld [vmem:[#allocation5 + $0xb8] sm:$0xff]  ;;  %v1729_v34 = vpack.c.bf16 %v127_v31, %v125_v30  ;;  %v129_v38 = vld [vmem:[#allocation5 + $0xa0] sm:$0xff] }
  0x65   :  { %1718 = vmatpush1.bf16.msra.mxu0 %v1717_v13  ;;  %v1731_v37 = vpack.c.bf16 %v132_v33, %v130_v32  ;;  %v131_v39 = vld [vmem:[#allocation5 + $0xb0] sm:$0xff]  ;;  %v134_v40 = vld [vmem:[#allocation5 + $0xc8] sm:$0xff]  ;;  %v136_v41 = vld [vmem:[#allocation5 + $0xd8] sm:$0xff] }
  0x66   :  { %1720 = vmatprep.subr.bf16.mxu0 %v1719_v14  ;;  %v1733_v42 = vpack.c.bf16 %v131_v39, %v129_v38  ;;  %v133_v43 = vld [vmem:[#allocation5 + $0xc0] sm:$0xff]  ;;  %v135_v44 = vld [vmem:[#allocation5 + $0xd0] sm:$0xff]  ;;  %v138_v45 = vld [vmem:[#allocation5 + $0xe8] sm:$0xff]  ;;  %v1735_v47 = vpack.c.bf16 %v136_v41, %v134_v40 }
  0x67   :  { %v140_v48 = vld [vmem:[#allocation5 + $0xf8] sm:$0xff]  ;;  %v2309_v49 = vld [vmem:[#allocation2] ss:$16 sps:$4 sm:$0xff]   ;;  %v2311_v50 = vld [vmem:[#allocation2 + $0x4] ss:$16 sps:$4 sm:$0xff]   ;;  %v1737_v53 = vpack.c.bf16 %v135_v44, %v133_v43 }
  0x68   :  { %v2312_v51 = vld [vmem:[#allocation2 + $0x20] ss:$16 sps:$4 sm:$0xff]   ;;  %v2314_v52 = vld [vmem:[#allocation2 + $0x24] ss:$16 sps:$4 sm:$0xff]   ;;  %v2614_v54 = vrot.slane %v2309_v49, %v2611_v46  ;;  %v1739_v55 = vpack.c.bf16 %v140_v48, %v138_v45  ;;  %v2620_v59 = vrot.slane %v2311_v50, %v2611_v46  ;;  %v142_v61 = vld [vmem:[#allocation5 + $0x108] sm:$0xff] }
  0x69   :  { %1722 = vmatpush1.bf16.msra.mxu0 %v1721_v19  ;;  %v137_v56 = vld [vmem:[#allocation5 + $0xe0] sm:$0xff]  ;;  %v139_v57 = vld [vmem:[#allocation5 + $0xf0] sm:$0xff]  ;;  %v2617_v58 = vrot.slane %v2312_v51, %v2611_v46  ;;  %v2623_v60 = vrot.slane %v2314_v52, %v2611_v46  ;;  %v144_v62 = vld [vmem:[#allocation5 + $0x118] sm:$0xff] }
  0x6a   :  { %1724 = vmatprep.subr.bf16.mxu0 %v1723_v20  ;;  %v1741_v0 = vpack.c.bf16 %v139_v57, %v137_v56  ;;  %v1743_v2 = vpack.c.bf16 %v144_v62, %v142_v61  ;;  %v141_v3 = vld [vmem:[#allocation5 + $0x100] sm:$0xff]  ;;  %v143_v4 = vld [vmem:[#allocation5 + $0x110] sm:$0xff]  ;;  %v146_v5 = vld [vmem:[#allocation5 + $0x128] sm:$0xff] }
  0x6b   :  { %v418_v63 = vcombine.high %v2614_v54, %v2617_v58  ;;  %v419_v1 = vcombine.low %v2620_v59, %v2623_v60  ;;  %v148_v6 = vld [vmem:[#allocation5 + $0x138] sm:$0xff]  ;;  %v1745_v7 = vpack.c.bf16 %v143_v4, %v141_v3  ;;  %v145_v9 = vld [vmem:[#allocation5 + $0x120] sm:$0xff]  ;;  %v147_v10 = vld [vmem:[#allocation5 + $0x130] sm:$0xff]  ;;  %v417_v61 = vcombine.low %v2614_v54, %v2617_v58 }
  0x6c   :  { %v1747_v8 = vpack.c.bf16 %v148_v6, %v146_v5  ;;  %v150_v11 = vld [vmem:[#allocation5 + $0x148] sm:$0xff]  ;;  %v152_v12 = vld [vmem:[#allocation5 + $0x158] sm:$0xff]  ;;  %v1749_v13 = vpack.c.bf16 %v147_v10, %v145_v9  ;;  %v149_v15 = vld [vmem:[#allocation5 + $0x140] sm:$0xff] }
  0x6d   :  { %1726 = vmatpush1.bf16.msra.mxu0 %v1725_v25  ;;  %529 = vmatprep.mubr.f32.mxu0 %v418_v63  ;;  %v1751_v14 = vpack.c.bf16 %v152_v12, %v150_v11  ;;  %v151_v16 = vld [vmem:[#allocation5 + $0x150] sm:$0xff]  ;;  %v154_v17 = vld [vmem:[#allocation5 + $0x168] sm:$0xff]  ;;  %v156_v18 = vld [vmem:[#allocation5 + $0x178] sm:$0xff]  ;;  %v420_v63 = vcombine.high %v2620_v59, %v2623_v60 }
  0x6e   :  { %1728 = vmatprep.subr.bf16.mxu0 %v1727_v29  ;;  %v1753_v19 = vpack.c.bf16 %v151_v16, %v149_v15  ;;  %v1755_v20 = vpack.c.bf16 %v156_v18, %v154_v17  ;;  %v153_v21 = vld [vmem:[#allocation5 + $0x160] sm:$0xff]  ;;  %v155_v22 = vld [vmem:[#allocation5 + $0x170] sm:$0xff]  ;;  %v158_v23 = vld [vmem:[#allocation5 + $0x188] sm:$0xff] }
  0x6f   :  { %v160_v24 = vld [vmem:[#allocation5 + $0x198] sm:$0xff]  ;;  %v1757_v25 = vpack.c.bf16 %v155_v22, %v153_v21  ;;  %v157_v27 = vld [vmem:[#allocation5 + $0x180] sm:$0xff]  ;;  %v159_v28 = vld [vmem:[#allocation5 + $0x190] sm:$0xff] }
  0x70   :  { %v1759_v26 = vpack.c.bf16 %v160_v24, %v158_v23  ;;  %v162_v29 = vld [vmem:[#allocation5 + $0x1a8] sm:$0xff]  ;;  %v164_v30 = vld [vmem:[#allocation5 + $0x1b8] sm:$0xff]  ;;  %v1761_v31 = vpack.c.bf16 %v159_v28, %v157_v27  ;;  %v161_v33 = vld [vmem:[#allocation5 + $0x1a0] sm:$0xff] }
  0x71   :  { %1730 = vmatpush1.bf16.msra.mxu0 %v1729_v34  ;;  %v1763_v32 = vpack.c.bf16 %v164_v30, %v162_v29  ;;  %v163_v34 = vld [vmem:[#allocation5 + $0x1b0] sm:$0xff]  ;;  %v166_v36 = vld [vmem:[#allocation5 + $0x1c8] sm:$0xff]  ;;  %v165_v40 = vld [vmem:[#allocation5 + $0x1c0] sm:$0xff] }
  0x72   :  { %1732 = vmatprep.subr.bf16.mxu0 %v1731_v37  ;;  %v168_v37 = vld [vmem:[#allocation5 + $0x1d8] sm:$0xff]  ;;  %v1765_v38 = vpack.c.bf16 %v163_v34, %v161_v33  ;;  %v167_v41 = vld [vmem:[#allocation5 + $0x1d0] sm:$0xff]  ;;  %v174_v49 = vld [vmem:[#allocation5 + $0x208] sm:$0xff] }
  0x73   :  { %v1767_v39 = vpack.c.bf16 %v168_v37, %v166_v36  ;;  %v172_v43 = vld [vmem:[#allocation5 + $0x1f8] sm:$0xff]  ;;  %v1769_v44 = vpack.c.bf16 %v167_v41, %v165_v40  ;;  %v171_v48 = vld [vmem:[#allocation5 + $0x1f0] sm:$0xff]  ;;  %v178_v56 = vld [vmem:[#allocation5 + $0x228] sm:$0xff] }
  0x74   :  { %v176_v50 = vld [vmem:[#allocation5 + $0x218] sm:$0xff]  ;;  %v179_v3 = vld [vmem:[#allocation5 + $0x230] sm:$0xff]  ;;  %v182_v4 = vld [vmem:[#allocation5 + $0x248] sm:$0xff] }
  0x75   :  { %1734 = vmatpush1.bf16.msra.mxu0 %v1733_v42  ;;  %v170_v42 = vld [vmem:[#allocation5 + $0x1e8] sm:$0xff]  ;;  %v1775_v52 = vpack.c.bf16 %v176_v50, %v174_v49  ;;  %v180_v57 = vld [vmem:[#allocation5 + $0x238] sm:$0xff]  ;;  %v181_v54 = vld [vmem:[#allocation5 + $0x240] sm:$0xff] }
  0x76   :  { %1736 = vmatprep.subr.bf16.mxu0 %v1735_v47  ;;  %v1771_v45 = vpack.c.bf16 %v172_v43, %v170_v42  ;;  %v169_v47 = vld [vmem:[#allocation5 + $0x1e0] sm:$0xff]  ;;  %v184_v5 = vld [vmem:[#allocation5 + $0x258] sm:$0xff]  ;;  %v183_v58 = vld [vmem:[#allocation5 + $0x250] sm:$0xff] }
  0x77   :  { %v1773_v51 = vpack.c.bf16 %v171_v48, %v169_v47  ;;  %v1783_v9 = vpack.c.bf16 %v184_v5, %v182_v4  ;;  %v186_v10 = vld [vmem:[#allocation5 + $0x268] sm:$0xff]  ;;  %v188_v11 = vld [vmem:[#allocation5 + $0x278] sm:$0xff]  ;;  %v185_v17 = vld [vmem:[#allocation5 + $0x260] sm:$0xff] }
  0x78   :  { %v1787_v16 = vpack.c.bf16 %v188_v11, %v186_v10  ;;  %v187_v18 = vld [vmem:[#allocation5 + $0x270] sm:$0xff]  ;;  %v189_v23 = vld [vmem:[#allocation5 + $0x280] sm:$0xff]  ;;  %v218_v4 = vld [vmem:[#allocation5 + $0x368] sm:$0xff] }
  0x79   :  { %1738 = vmatpush1.bf16.msra.mxu0 %v1737_v53  ;;  %v173_v53 = vld [vmem:[#allocation5 + $0x200] sm:$0xff]  ;;  %v1789_v21 = vpack.c.bf16 %v187_v18, %v185_v17  ;;  %v191_v24 = vld [vmem:[#allocation5 + $0x290] sm:$0xff]  ;;  %v220_v5 = vld [vmem:[#allocation5 + $0x378] sm:$0xff] }
  0x7a   :  { %1740 = vmatprep.subr.bf16.mxu0 %v1739_v55  ;;  %v175_v55 = vld [vmem:[#allocation5 + $0x210] sm:$0xff]  ;;  %v1793_v27 = vpack.c.bf16 %v191_v24, %v189_v23  ;;  %v193_v29 = vld [vmem:[#allocation5 + $0x2a0] sm:$0xff]  ;;  %v226_v17 = vld [vmem:[#allocation5 + $0x3a8] sm:$0xff] }
  0x7b   :  { %v1777_v62 = vpack.c.bf16 %v175_v55, %v173_v53  ;;  %v195_v30 = vld [vmem:[#allocation5 + $0x2b0] sm:$0xff]  ;;  %v197_v36 = vld [vmem:[#allocation5 + $0x2c0] sm:$0xff]  ;;  %v228_v18 = vld [vmem:[#allocation5 + $0x3b8] sm:$0xff] }
  0x7c   :  { %v1797_v33 = vpack.c.bf16 %v195_v30, %v193_v29  ;;  %v199_v37 = vld [vmem:[#allocation5 + $0x2d0] sm:$0xff]  ;;  %v201_v42 = vld [vmem:[#allocation5 + $0x2e0] sm:$0xff]  ;;  %v230_v23 = vld [vmem:[#allocation5 + $0x3c8] sm:$0xff] }
  0x7d   :  { %1742 = vmatpush1.bf16.msra.mxu0 %v1741_v0  ;;  %v1779_v0 = vpack.c.bf16 %v180_v57, %v178_v56  ;;  %v1801_v40 = vpack.c.bf16 %v199_v37, %v197_v36  ;;  %v203_v43 = vld [vmem:[#allocation5 + $0x2f0] sm:$0xff]  ;;  %v205_v49 = vld [vmem:[#allocation5 + $0x300] sm:$0xff]  ;;  %v232_v24 = vld [vmem:[#allocation5 + $0x3d8] sm:$0xff] }
  0x7e   :  { %1744 = vmatprep.subr.bf16.mxu0 %v1743_v2  ;;  %v177_v2 = vld [vmem:[#allocation5 + $0x220] sm:$0xff]  ;;  %v1805_v47 = vpack.c.bf16 %v203_v43, %v201_v42  ;;  %v207_v50 = vld [vmem:[#allocation5 + $0x310] sm:$0xff]  ;;  %v234_v29 = vld [vmem:[#allocation5 + $0x3e8] sm:$0xff] }
  0x7f   :  { %v1781_v6 = vpack.c.bf16 %v179_v3, %v177_v2  ;;  %v1809_v53 = vpack.c.bf16 %v207_v50, %v205_v49  ;;  %v209_v56 = vld [vmem:[#allocation5 + $0x320] sm:$0xff]  ;;  %v211_v57 = vld [vmem:[#allocation5 + $0x330] sm:$0xff]  ;;  %v236_v30 = vld [vmem:[#allocation5 + $0x3f8] sm:$0xff] }
  0x80   :  { %v213_v2 = vld [vmem:[#allocation5 + $0x340] sm:$0xff]  ;;  %v215_v3 = vld [vmem:[#allocation5 + $0x350] sm:$0xff]  ;;  %v238_v36 = vld [vmem:[#allocation5 + $0x408] sm:$0xff] }
  0x81   :  { %1746 = vmatpush1.bf16.msra.mxu0 %v1745_v7  ;;  %v2315_v7 = vld [vmem:[#allocation2 + $0x8] ss:$16 sps:$4 sm:$0xff]   ;;  %v239_v42 = vld [vmem:[#allocation5 + $0x410] sm:$0xff]  ;;  %v2320_v43 = vld [vmem:[#allocation2 + $0x2c] ss:$16 sps:$4 sm:$0xff]  }
  0x82   :  { %1748 = vmatprep.subr.bf16.mxu0 %v1747_v8  ;;  %v2317_v8 = vld [vmem:[#allocation2 + $0x28] ss:$16 sps:$4 sm:$0xff]   ;;  %v2634_v12 = vrot.slane %v2315_v7, %v2611_v46  ;;  %v1819_v7 = vpack.c.bf16 %v220_v5, %v218_v4  ;;  %v771_v59 = vld [vmem:[#allocation8 + $0xa0] sm:$0xff] }
  0x83   :  { %v240_v37 = vld [vmem:[#allocation5 + $0x418] sm:$0xff]  ;;  %v752_v5 = vld [vmem:[#allocation8 + $0x8] sm:$0xff] }
  0x84   :  { %v250_v60 = vld [vmem:[#allocation5 + $0x468] sm:$0xff] }
  0x85   :  { %1750 = vmatpush1.bf16.msra.mxu0 %v1749_v13  ;;  %v2637_v13 = vrot.slane %v2317_v8, %v2611_v46  ;;  %v217_v8 = vld [vmem:[#allocation5 + $0x360] sm:$0xff] }
  0x86   :  { %1752 = vmatprep.subr.bf16.mxu0 %v1751_v14  ;;  %v1785_v14 = vpack.c.bf16 %v183_v58, %v181_v54  ;;  %v222_v54 = vld [vmem:[#allocation5 + $0x388] sm:$0xff]  ;;  %v224_v58 = vld [vmem:[#allocation5 + $0x398] sm:$0xff] }
  0x87   :  { %v453_v15 = vcombine.low %v2634_v12, %v2637_v13  ;;  %v1823_v11 = vpack.c.bf16 %v224_v58, %v222_v54  ;;  %v454_v50 = vcombine.high %v2634_v12, %v2637_v13  ;;  %v753_v58 = vld [vmem:[#allocation8 + $0x10] sm:$0xff] }
  0x89   :  { %1754 = vmatpush1.bf16.msra.mxu0 %v1753_v19  ;;  %v190_v19 = vld [vmem:[#allocation5 + $0x288] sm:$0xff] }
  0x8a   :  { %1756 = vmatprep.subr.bf16.mxu0 %v1755_v20  ;;  %v192_v20 = vld [vmem:[#allocation5 + $0x298] sm:$0xff] }
  0x8b   :  { %v1791_v22 = vpack.c.bf16 %v192_v20, %v190_v19  ;;  %v1827_v20 = vpack.c.bf16 %v228_v18, %v226_v17  ;;  %v249_v17 = vld [vmem:[#allocation5 + $0x460] sm:$0xff] }
  0x8d   :  { %1758 = vmatpush1.bf16.msra.mxu0 %v1757_v25  ;;  %v194_v25 = vld [vmem:[#allocation5 + $0x2a8] sm:$0xff] }
  0x8e   :  { %1760 = vmatprep.subr.bf16.mxu0 %v1759_v26  ;;  %v196_v26 = vld [vmem:[#allocation5 + $0x2b8] sm:$0xff] }
  0x8f   :  { %v1795_v28 = vpack.c.bf16 %v196_v26, %v194_v25  ;;  %v1831_v26 = vpack.c.bf16 %v232_v24, %v230_v23  ;;  %v773_v23 = vld [vmem:[#allocation8 + $0xb0] sm:$0xff]  ;;  %v774_v24 = vld [vmem:[#allocation8 + $0xb8] sm:$0xff] }
  0x91   :  { %1762 = vmatpush1.bf16.msra.mxu0 %v1761_v31  ;;  %v198_v31 = vld [vmem:[#allocation5 + $0x2c8] sm:$0xff] }
  0x92   :  { %1764 = vmatprep.subr.bf16.mxu0 %v1763_v32  ;;  %v200_v32 = vld [vmem:[#allocation5 + $0x2d8] sm:$0xff] }
  0x93   :  { %v1799_v34 = vpack.c.bf16 %v200_v32, %v198_v31  ;;  %v1835_v32 = vpack.c.bf16 %v236_v30, %v234_v29  ;;  %v253_v29 = vld [vmem:[#allocation5 + $0x480] sm:$0xff]  ;;  %v1979_v30 = vpack.c.bf16 %v774_v24, %v773_v23  ;;  %v275_v24 = vld [vmem:[#allocation5 + $0x530] sm:$0xff] }
  0x94   :  { %v273_v23 = vld [vmem:[#allocation5 + $0x520] sm:$0xff] }
  0x95   :  { %1766 = vmatpush1.bf16.msra.mxu0 %v1765_v38  ;;  %v202_v38 = vld [vmem:[#allocation5 + $0x2e8] sm:$0xff] }
  0x96   :  { %1768 = vmatprep.subr.bf16.mxu0 %v1767_v39  ;;  %v204_v39 = vld [vmem:[#allocation5 + $0x2f8] sm:$0xff] }
  0x97   :  { %v1803_v41 = vpack.c.bf16 %v204_v39, %v202_v38  ;;  %v2319_v39 = vld [vmem:[#allocation2 + $0xc] ss:$16 sps:$4 sm:$0xff]  }
  0x99   :  { %1770 = vmatpush1.bf16.msra.mxu0 %v1769_v44  ;;  %v206_v44 = vld [vmem:[#allocation5 + $0x308] sm:$0xff] }
  0x9a   :  { %1772 = vmatprep.subr.bf16.mxu0 %v1771_v45  ;;  %v208_v45 = vld [vmem:[#allocation5 + $0x318] sm:$0xff] }
  0x9b   :  { %v1807_v48 = vpack.c.bf16 %v208_v45, %v206_v44  ;;  %v242_v44 = vld [vmem:[#allocation5 + $0x428] sm:$0xff]  ;;  %v244_v45 = vld [vmem:[#allocation5 + $0x438] sm:$0xff] }
  0x9d   :  { %1774 = vmatpush1.bf16.msra.mxu0 %v1773_v51  ;;  %v210_v51 = vld [vmem:[#allocation5 + $0x328] sm:$0xff] }
  0x9e   :  { %1776 = vmatprep.subr.bf16.mxu0 %v1775_v52  ;;  %v212_v52 = vld [vmem:[#allocation5 + $0x338] sm:$0xff] }
  0x9f   :  { %v1811_v55 = vpack.c.bf16 %v212_v52, %v210_v51  ;;  %v1843_v51 = vpack.c.bf16 %v244_v45, %v242_v44  ;;  %v241_v52 = vld [vmem:[#allocation5 + $0x420] sm:$0xff]  ;;  %v760_v45 = vld [vmem:[#allocation8 + $0x48] sm:$0xff] }
  0xa0   :  { %530 = vmatmul.mubr.f32.vlgmr.msra.gmra.mrb[0].mxu0 %v417_v61  ;;  %v214_v61 = vld [vmem:[#allocation5 + $0x348] sm:$0xff]  ;;  %v759_v44 = vld [vmem:[#allocation8 + $0x40] sm:$0xff] }
  0xa1   :  { %1778 = vmatpush1.bf16.msra.mxu0 %v1777_v62  ;;  %600 = vmatprep.mubr.f32.mxu0 %v420_v63  ;;  %v216_v62 = vld [vmem:[#allocation5 + $0x358] sm:$0xff]  ;;  %v1813_v63 = vpack.c.bf16 %v211_v57, %v209_v56  ;;  %v246_v56 = vld [vmem:[#allocation5 + $0x448] sm:$0xff] }
  0xa2   :  { %1780 = vmatprep.subr.bf16.mxu0 %v1779_v0  ;;  %v1815_v0 = vpack.c.bf16 %v216_v62, %v214_v61  ;;  %v248_v57 = vld [vmem:[#allocation5 + $0x458] sm:$0xff]  ;;  %v245_v61 = vld [vmem:[#allocation5 + $0x440] sm:$0xff]  ;;  %v247_v62 = vld [vmem:[#allocation5 + $0x450] sm:$0xff] }
  0xa5   :  { %1782 = vmatpush1.bf16.msra.mxu0 %v1781_v6  ;;  %v1817_v6 = vpack.c.bf16 %v215_v3, %v213_v2  ;;  %v751_v2 = vld [vmem:[#allocation8] sm:$0xff] }
  0xa6   :  { %1784 = vmatprep.subr.bf16.mxu0 %v1783_v9  ;;  %v219_v9 = vld [vmem:[#allocation5 + $0x370] sm:$0xff] }
  0xa7   :  { %v1821_v10 = vpack.c.bf16 %v219_v9, %v217_v8  ;;  %v1847_v8 = vpack.c.bf16 %v248_v57, %v246_v56  ;;  %v1969_v9 = vpack.c.bf16 %v752_v5, %v751_v2  ;;  %v264_v56 = vld [vmem:[#allocation5 + $0x4d8] sm:$0xff]  ;;  %v1985_v57 = vpack.c.bf16 %v760_v45, %v759_v44  ;;  %v779_v5 = vld [vmem:[#allocation8 + $0xe0] sm:$0xff]  ;;  %v290_v44 = vld [vmem:[#allocation5 + $0x5a8] sm:$0xff] }
  0xa8   :  { %v762_v2 = vld [vmem:[#allocation8 + $0x58] sm:$0xff] }
  0xa9   :  { %1786 = vmatpush1.bf16.msra.mxu0 %v1785_v14  ;;  %v221_v14 = vld [vmem:[#allocation5 + $0x380] sm:$0xff]  ;;  %v292_v45 = vld [vmem:[#allocation5 + $0x5b8] sm:$0xff] }
  0xaa   :  { %1788 = vmatprep.subr.bf16.mxu0 %v1787_v16  ;;  %v223_v16 = vld [vmem:[#allocation5 + $0x390] sm:$0xff] }
  0xab   :  { %v1825_v19 = vpack.c.bf16 %v223_v16, %v221_v14  ;;  %v1849_v16 = vpack.c.bf16 %v247_v62, %v245_v61  ;;  %v261_v62 = vld [vmem:[#allocation5 + $0x4c0] sm:$0xff] }
  0xad   :  { %1790 = vmatpush1.bf16.msra.mxu0 %v1789_v21  ;;  %v225_v21 = vld [vmem:[#allocation5 + $0x3a0] sm:$0xff] }
  0xae   :  { %1792 = vmatprep.subr.bf16.mxu0 %v1791_v22  ;;  %v227_v22 = vld [vmem:[#allocation5 + $0x3b0] sm:$0xff] }
  0xaf   :  { %v1829_v25 = vpack.c.bf16 %v227_v22, %v225_v21  ;;  %v251_v22 = vld [vmem:[#allocation5 + $0x470] sm:$0xff] }
  0xb1   :  { %1794 = vmatpush1.bf16.msra.mxu0 %v1793_v27  ;;  %v229_v27 = vld [vmem:[#allocation5 + $0x3c0] sm:$0xff] }
  0xb2   :  { %1796 = vmatprep.subr.bf16.mxu0 %v1795_v28  ;;  %v231_v28 = vld [vmem:[#allocation5 + $0x3d0] sm:$0xff] }
  0xb3   :  { %v1833_v31 = vpack.c.bf16 %v231_v28, %v229_v27  ;;  %v1853_v28 = vpack.c.bf16 %v251_v22, %v249_v17  ;;  %v269_v17 = vld [vmem:[#allocation5 + $0x500] sm:$0xff] }
  0xb5   :  { %1798 = vmatpush1.bf16.msra.mxu0 %v1797_v33  ;;  %v233_v33 = vld [vmem:[#allocation5 + $0x3e0] sm:$0xff] }
  0xb6   :  { %1800 = vmatprep.subr.bf16.mxu0 %v1799_v34  ;;  %v235_v34 = vld [vmem:[#allocation5 + $0x3f0] sm:$0xff] }
  0xb7   :  { %v1837_v38 = vpack.c.bf16 %v235_v34, %v233_v33  ;;  %v255_v34 = vld [vmem:[#allocation5 + $0x490] sm:$0xff] }
  0xb9   :  { %1802 = vmatpush1.bf16.msra.mxu0 %v1801_v40  ;;  %v1839_v40 = vpack.c.bf16 %v240_v37, %v238_v36  ;;  %v775_v36 = vld [vmem:[#allocation8 + $0xc0] sm:$0xff]  ;;  %v776_v37 = vld [vmem:[#allocation8 + $0xc8] sm:$0xff] }
  0xba   :  { %1804 = vmatprep.subr.bf16.mxu0 %v1803_v41  ;;  %v237_v41 = vld [vmem:[#allocation5 + $0x400] sm:$0xff] }
  0xbb   :  { %v1841_v49 = vpack.c.bf16 %v239_v42, %v237_v41  ;;  %v1857_v41 = vpack.c.bf16 %v255_v34, %v253_v29  ;;  %v257_v42 = vld [vmem:[#allocation5 + $0x4a0] sm:$0xff] }
  0xbc   :  { %v277_v29 = vld [vmem:[#allocation5 + $0x540] sm:$0xff] }
  0xbd   :  { %1806 = vmatpush1.bf16.msra.mxu0 %v1805_v47  ;;  %v2642_v47 = vrot.slane %v2319_v39, %v2611_v46  ;;  %v260_v39 = vld [vmem:[#allocation5 + $0x4b8] sm:$0xff] }
  0xbe   :  { %1808 = vmatprep.subr.bf16.mxu0 %v1807_v48  ;;  %v2645_v48 = vrot.slane %v2320_v43, %v2611_v46  ;;  %v1983_v43 = vpack.c.bf16 %v776_v37, %v775_v36  ;;  %v281_v36 = vld [vmem:[#allocation5 + $0x560] sm:$0xff]  ;;  %v283_v37 = vld [vmem:[#allocation5 + $0x570] sm:$0xff] }
  0xc1   :  { %1810 = vmatpush1.bf16.msra.mxu0 %v1809_v53  ;;  %v243_v53 = vld [vmem:[#allocation5 + $0x430] sm:$0xff] }
  0xc2   :  { %1812 = vmatprep.subr.bf16.mxu0 %v1811_v55  ;;  %v455_v55 = vcombine.low %v2642_v47, %v2645_v48  ;;  %v1845_v3 = vpack.c.bf16 %v243_v53, %v241_v52  ;;  %v778_v52 = vld [vmem:[#allocation8 + $0xd8] sm:$0xff]  ;;  %v262_v53 = vld [vmem:[#allocation5 + $0x4c8] sm:$0xff] }
  0xc5   :  { %1814 = vmatpush1.bf16.msra.mxu0 %v1813_v63  ;;  %v767_v63 = vld [vmem:[#allocation8 + $0x80] sm:$0xff] }
  0xc6   :  { %1816 = vmatprep.subr.bf16.mxu0 %v1815_v0  ;;  %v768_v0 = vld [vmem:[#allocation8 + $0x88] sm:$0xff] }
  0xc7   :  { %v1967_v4 = vpack.c.bf16 %v768_v0, %v767_v63  ;;  %v761_v0 = vld [vmem:[#allocation8 + $0x50] sm:$0xff] }
  0xc9   :  { %1818 = vmatpush1.bf16.msra.mxu0 %v1817_v6  ;;  %v769_v6 = vld [vmem:[#allocation8 + $0x90] sm:$0xff]  ;;  %1968 = vmatprep.subr.bf16.mxu1 %v1967_v4 }
  0xca   :  { %1820 = vmatprep.subr.bf16.mxu0 %v1819_v7  ;;  %v770_v7 = vld [vmem:[#allocation8 + $0x98] sm:$0xff]  ;;  %1970 = vmatpush3.bf16.msra.mxu1 %v1969_v9  ;;  %v263_v4 = vld [vmem:[#allocation5 + $0x4d0] sm:$0xff]  ;;  %v1989_v9 = vpack.c.bf16 %v762_v2, %v761_v0  ;;  %v298_v0 = vld [vmem:[#allocation5 + $0x5e8] sm:$0xff] }
  0xcb   :  { %v1971_v54 = vpack.c.bf16 %v770_v7, %v769_v6  ;;  %v780_v6 = vld [vmem:[#allocation8 + $0xe8] sm:$0xff]  ;;  %v300_v2 = vld [vmem:[#allocation5 + $0x5f8] sm:$0xff] }
  0xcc   :  { %v266_v7 = vld [vmem:[#allocation5 + $0x4e8] sm:$0xff] }
  0xcd   :  { %1822 = vmatpush1.bf16.msra.mxu0 %v1821_v10  ;;  %v754_v10 = vld [vmem:[#allocation8 + $0x18] sm:$0xff]  ;;  %1972 = vmatprep.subr.bf16.mxu1 %v1971_v54  ;;  %v1865_v54 = vpack.c.bf16 %v263_v4, %v261_v62  ;;  %v293_v62 = vld [vmem:[#allocation5 + $0x5c0] sm:$0xff]  ;;  %v1899_v4 = vpack.c.bf16 %v300_v2, %v298_v0  ;;  %v335_v2 = vld [vmem:[#allocation5 + $0x710] sm:$0xff] }
  0xce   :  { %1824 = vmatprep.subr.bf16.mxu0 %v1823_v11  ;;  %v772_v11 = vld [vmem:[#allocation8 + $0xa8] sm:$0xff]  ;;  %v1973_v14 = vpack.c.bf16 %v754_v10, %v753_v58  ;;  %v1991_v58 = vpack.c.bf16 %v780_v6, %v779_v5  ;;  %v297_v5 = vld [vmem:[#allocation5 + $0x5e0] sm:$0xff]  ;;  %v299_v6 = vld [vmem:[#allocation5 + $0x5f0] sm:$0xff] }
  0xcf   :  { %v1975_v18 = vpack.c.bf16 %v772_v11, %v771_v59  ;;  %v265_v59 = vld [vmem:[#allocation5 + $0x4e0] sm:$0xff]  ;;  %v272_v11 = vld [vmem:[#allocation5 + $0x518] sm:$0xff] }
  0xd0   :  { %1974 = vmatpush3.bf16.msra.mxu1 %v1973_v14  ;;  %v333_v0 = vld [vmem:[#allocation5 + $0x700] sm:$0xff] }
  0xd1   :  { %1826 = vmatpush1.bf16.msra.mxu0 %v1825_v19  ;;  %v755_v19 = vld [vmem:[#allocation8 + $0x20] sm:$0xff]  ;;  %1976 = vmatprep.subr.bf16.mxu1 %v1975_v18  ;;  %v271_v18 = vld [vmem:[#allocation5 + $0x510] sm:$0xff] }
  0xd2   :  { %1828 = vmatprep.subr.bf16.mxu0 %v1827_v20  ;;  %v756_v20 = vld [vmem:[#allocation8 + $0x28] sm:$0xff] }
  0xd3   :  { %v1977_v27 = vpack.c.bf16 %v756_v20, %v755_v19  ;;  %v274_v19 = vld [vmem:[#allocation5 + $0x528] sm:$0xff]  ;;  %v276_v20 = vld [vmem:[#allocation5 + $0x538] sm:$0xff] }
  0xd4   :  { %v1875_v22 = vpack.c.bf16 %v276_v20, %v274_v19  ;;  %v312_v19 = vld [vmem:[#allocation5 + $0x658] sm:$0xff] }
  0xd5   :  { %1830 = vmatpush1.bf16.msra.mxu0 %v1829_v25  ;;  %v254_v25 = vld [vmem:[#allocation5 + $0x488] sm:$0xff]  ;;  %1978 = vmatpush3.bf16.msra.mxu1 %v1977_v27  ;;  %v1877_v27 = vpack.c.bf16 %v275_v24, %v273_v23  ;;  %v311_v23 = vld [vmem:[#allocation5 + $0x650] sm:$0xff] }
  0xd6   :  { %1832 = vmatprep.subr.bf16.mxu0 %v1831_v26  ;;  %v256_v26 = vld [vmem:[#allocation5 + $0x498] sm:$0xff]  ;;  %1980 = vmatprep.subr.bf16.mxu1 %v1979_v30  ;;  %v279_v30 = vld [vmem:[#allocation5 + $0x550] sm:$0xff]  ;;  %v314_v24 = vld [vmem:[#allocation5 + $0x668] sm:$0xff] }
  0xd7   :  { %v1855_v33 = vpack.c.bf16 %v256_v26, %v254_v25  ;;  %v278_v25 = vld [vmem:[#allocation5 + $0x548] sm:$0xff]  ;;  %v280_v26 = vld [vmem:[#allocation5 + $0x558] sm:$0xff] }
  0xd9   :  { %1834 = vmatpush1.bf16.msra.mxu0 %v1833_v31  ;;  %v757_v31 = vld [vmem:[#allocation8 + $0x30] sm:$0xff] }
  0xda   :  { %1836 = vmatprep.subr.bf16.mxu0 %v1835_v32  ;;  %v758_v32 = vld [vmem:[#allocation8 + $0x38] sm:$0xff] }
  0xdd   :  { %1838 = vmatpush1.bf16.msra.mxu0 %v1837_v38  ;;  %v258_v38 = vld [vmem:[#allocation5 + $0x4a8] sm:$0xff] }
  0xde   :  { %1840 = vmatprep.subr.bf16.mxu0 %v1839_v40  ;;  %v1981_v40 = vpack.c.bf16 %v758_v32, %v757_v31  ;;  %v282_v31 = vld [vmem:[#allocation5 + $0x568] sm:$0xff]  ;;  %v284_v32 = vld [vmem:[#allocation5 + $0x578] sm:$0xff] }
  0xdf   :  { %v1883_v34 = vpack.c.bf16 %v284_v32, %v282_v31  ;;  %v320_v31 = vld [vmem:[#allocation5 + $0x698] sm:$0xff]  ;;  %v319_v32 = vld [vmem:[#allocation5 + $0x690] sm:$0xff] }
  0xe0   :  { %601 = vmatmul.mubr.f32.vlgmr.msra.gmra.mrb[0].mxu0 %v419_v1  ;;  %v252_v1 = vld [vmem:[#allocation5 + $0x478] sm:$0xff]  ;;  %1982 = vmatpush3.bf16.msra.mxu1 %v1981_v40  ;;  %v1885_v40 = vpack.c.bf16 %v283_v37, %v281_v36 }
  0xe1   :  { %1842 = vmatpush1.bf16.msra.mxu0 %v1841_v49  ;;  %671 = vmatprep.mubr.f32.mxu0 %v454_v50  ;;  %v1851_v21 = vpack.c.bf16 %v252_v1, %v250_v60  ;;  %v1859_v49 = vpack.c.bf16 %v260_v39, %v258_v38  ;;  %v259_v50 = vld [vmem:[#allocation5 + $0x4b0] sm:$0xff]  ;;  %v270_v1 = vld [vmem:[#allocation5 + $0x508] sm:$0xff]  ;;  %v288_v39 = vld [vmem:[#allocation5 + $0x598] sm:$0xff] }
  0xe2   :  { %1844 = vmatprep.subr.bf16.mxu0 %v1843_v51  ;;  %v777_v51 = vld [vmem:[#allocation8 + $0xd0] sm:$0xff]  ;;  %v1861_v61 = vpack.c.bf16 %v259_v50, %v257_v42  ;;  %1984 = vmatprep.subr.bf16.mxu1 %v1983_v43  ;;  %v286_v38 = vld [vmem:[#allocation5 + $0x588] sm:$0xff]  ;;  %v285_v42 = vld [vmem:[#allocation5 + $0x580] sm:$0xff]  ;;  %v1891_v50 = vpack.c.bf16 %v292_v45, %v290_v44 }
  0xe3   :  { %v1987_v63 = vpack.c.bf16 %v778_v52, %v777_v51  ;;  %v267_v60 = vld [vmem:[#allocation5 + $0x4f0] sm:$0xff]  ;;  %v289_v51 = vld [vmem:[#allocation5 + $0x5a0] sm:$0xff] }
  0xe4   :  { %1986 = vmatpush3.bf16.msra.mxu1 %v1985_v57  ;;  %v1869_v14 = vpack.c.bf16 %v267_v60, %v265_v59  ;;  %v287_v43 = vld [vmem:[#allocation5 + $0x590] sm:$0xff]  ;;  %v306_v59 = vld [vmem:[#allocation5 + $0x628] sm:$0xff]  ;;  %v308_v60 = vld [vmem:[#allocation5 + $0x638] sm:$0xff] }
  0xe5   :  { %1846 = vmatpush1.bf16.msra.mxu0 %v1845_v3  ;;  %v1863_v3 = vpack.c.bf16 %v264_v56, %v262_v53  ;;  %1988 = vmatprep.subr.bf16.mxu1 %v1987_v63  ;;  %v291_v52 = vld [vmem:[#allocation5 + $0x5b0] sm:$0xff]  ;;  %v294_v53 = vld [vmem:[#allocation5 + $0x5c8] sm:$0xff]  ;;  %v296_v56 = vld [vmem:[#allocation5 + $0x5d8] sm:$0xff] }
  0xe6   :  { %1848 = vmatprep.subr.bf16.mxu0 %v1847_v8  ;;  %v268_v8 = vld [vmem:[#allocation5 + $0x4f8] sm:$0xff]  ;;  %v1893_v57 = vpack.c.bf16 %v291_v52, %v289_v51  ;;  %v295_v63 = vld [vmem:[#allocation5 + $0x5d0] sm:$0xff]  ;;  %v325_v44 = vld [vmem:[#allocation5 + $0x6c0] sm:$0xff] }
  0xe7   :  { %v1867_v10 = vpack.c.bf16 %v268_v8, %v266_v7  ;;  %v302_v7 = vld [vmem:[#allocation5 + $0x608] sm:$0xff]  ;;  %v304_v8 = vld [vmem:[#allocation5 + $0x618] sm:$0xff]  ;;  %v327_v45 = vld [vmem:[#allocation5 + $0x6d0] sm:$0xff] }
  0xe8   :  { %1990 = vmatpush3.bf16.msra.mxu1 %v1989_v9  ;;  %v1901_v9 = vpack.c.bf16 %v299_v6, %v297_v5  ;;  %v1929_v51 = vpack.c.bf16 %v327_v45, %v325_v44  ;;  %v1937_v5 = vpack.c.bf16 %v335_v2, %v333_v0  ;;  %v781_v45 = vld [vmem:[#allocation8 + $0xf0] sm:$0xff] }
  0xe9   :  { %1850 = vmatpush1.bf16.msra.mxu0 %v1849_v16  ;;  %1992 = vmatprep.subr.bf16.mxu1 %v1991_v58  ;;  %v1871_v16 = vpack.c.bf16 %v272_v11, %v270_v1  ;;  %v301_v58 = vld [vmem:[#allocation5 + $0x600] sm:$0xff]  ;;  %v456_v11 = vcombine.high %v2642_v47, %v2645_v48  ;;  %v2669_v48 = vsub.s32 1, %v2608_v35 }
  0xea   :  { %1852 = vmatprep.subr.bf16.mxu0 %v1851_v21  ;;  %v1873_v21 = vpack.c.bf16 %v271_v18, %v269_v17  ;;  %v307_v17 = vld [vmem:[#allocation5 + $0x630] sm:$0xff]  ;;  %v310_v18 = vld [vmem:[#allocation5 + $0x648] sm:$0xff]  ;;  %v365_v47 = vld [vmem:[%s2730_s3] sm:$0x3] }
  0xed   :  { %1854 = vmatpush1.bf16.msra.mxu0 %v1853_v28  ;;  %v1879_v28 = vpack.c.bf16 %v280_v26, %v278_v25  ;;  %v316_v25 = vld [vmem:[#allocation5 + $0x678] sm:$0xff] }
  0xee   :  { %1856 = vmatprep.subr.bf16.mxu0 %v1855_v33  ;;  %v1881_v33 = vpack.c.bf16 %v279_v30, %v277_v29  ;;  %v315_v29 = vld [vmem:[#allocation5 + $0x670] sm:$0xff]  ;;  %v318_v30 = vld [vmem:[#allocation5 + $0x688] sm:$0xff] }
  0xef   :  { %v1919_v13 = vpack.c.bf16 %v320_v31, %v318_v30  ;;  %v355_v30 = vld [vmem:[#allocation5 + $0x7b0] sm:$0xff]  ;;  %v358_v31 = vld [vmem:[#allocation5 + $0x7c8] sm:$0xff] }
  0xf1   :  { %1858 = vmatpush1.bf16.msra.mxu0 %v1857_v41  ;;  %v1887_v41 = vpack.c.bf16 %v288_v39, %v286_v38  ;;  %v321_v38 = vld [vmem:[#allocation5 + $0x6a0] sm:$0xff]  ;;  %v323_v39 = vld [vmem:[#allocation5 + $0x6b0] sm:$0xff] }
  0xf2   :  { %1860 = vmatprep.subr.bf16.mxu0 %v1859_v49  ;;  %v1889_v49 = vpack.c.bf16 %v287_v43, %v285_v42  ;;  %v1925_v42 = vpack.c.bf16 %v323_v39, %v321_v38  ;;  %v361_v39 = vld [vmem:[#allocation5 + $0x7e0] sm:$0xff] }
  0xf5   :  { %1862 = vmatpush1.bf16.msra.mxu0 %v1861_v61  ;;  %v1895_v61 = vpack.c.bf16 %v296_v56, %v294_v53  ;;  %v329_v53 = vld [vmem:[#allocation5 + $0x6e0] sm:$0xff]  ;;  %v331_v56 = vld [vmem:[#allocation5 + $0x6f0] sm:$0xff] }
  0xf6   :  { %1864 = vmatprep.subr.bf16.mxu0 %v1863_v3  ;;  %v1897_v3 = vpack.c.bf16 %v295_v63, %v293_v62  ;;  %v1933_v62 = vpack.c.bf16 %v331_v56, %v329_v53  ;;  %v862_v56 = vld [vmem:[#allocation10 + $0x8] sm:$0xff] }
  0xf9   :  { %1866 = vmatpush1.bf16.msra.mxu0 %v1865_v54  ;;  %v1903_v54 = vpack.c.bf16 %v304_v8, %v302_v7  ;;  %v337_v7 = vld [vmem:[#allocation5 + $0x720] sm:$0xff]  ;;  %v339_v8 = vld [vmem:[#allocation5 + $0x730] sm:$0xff] }
  0xfa   :  { %1868 = vmatprep.subr.bf16.mxu0 %v1867_v10  ;;  %v303_v10 = vld [vmem:[#allocation5 + $0x610] sm:$0xff] }
  0xfb   :  { %v1905_v1 = vpack.c.bf16 %v303_v10, %v301_v58  ;;  %v1941_v58 = vpack.c.bf16 %v339_v8, %v337_v7  ;;  %v866_v7 = vld [vmem:[#allocation10 + $0x28] sm:$0xff]  ;;  %v868_v8 = vld [vmem:[#allocation10 + $0x38] sm:$0xff] }
  0xfd   :  { %1870 = vmatpush1.bf16.msra.mxu0 %v1869_v14  ;;  %v1907_v14 = vpack.c.bf16 %v308_v60, %v306_v59  ;;  %v341_v59 = vld [vmem:[#allocation5 + $0x740] sm:$0xff]  ;;  %v343_v60 = vld [vmem:[#allocation5 + $0x750] sm:$0xff] }
  0xfe   :  { %1872 = vmatprep.subr.bf16.mxu0 %v1871_v16  ;;  %v305_v16 = vld [vmem:[#allocation5 + $0x620] sm:$0xff] }
  0xff   :  { %v1909_v20 = vpack.c.bf16 %v307_v17, %v305_v16  ;;  %v345_v17 = vld [vmem:[#allocation5 + $0x760] sm:$0xff] }
 0x101   :  { %1874 = vmatpush1.bf16.msra.mxu0 %v1873_v21  ;;  %v1911_v21 = vpack.c.bf16 %v312_v19, %v310_v18  ;;  %v347_v18 = vld [vmem:[#allocation5 + $0x770] sm:$0xff]  ;;  %v350_v19 = vld [vmem:[#allocation5 + $0x788] sm:$0xff] }
 0x102   :  { %1876 = vmatprep.subr.bf16.mxu0 %v1875_v22  ;;  %v309_v22 = vld [vmem:[#allocation5 + $0x640] sm:$0xff] }
 0x103   :  { %v1913_v26 = vpack.c.bf16 %v311_v23, %v309_v22  ;;  %v349_v23 = vld [vmem:[#allocation5 + $0x780] sm:$0xff] }
 0x105   :  { %1878 = vmatpush1.bf16.msra.mxu0 %v1877_v27  ;;  %v1915_v27 = vpack.c.bf16 %v316_v25, %v314_v24  ;;  %v351_v24 = vld [vmem:[#allocation5 + $0x790] sm:$0xff]  ;;  %v354_v25 = vld [vmem:[#allocation5 + $0x7a8] sm:$0xff] }
 0x106   :  { %1880 = vmatprep.subr.bf16.mxu0 %v1879_v28  ;;  %v313_v28 = vld [vmem:[#allocation5 + $0x660] sm:$0xff] }
 0x107   :  { %v1917_v12 = vpack.c.bf16 %v315_v29, %v313_v28  ;;  %v353_v29 = vld [vmem:[#allocation5 + $0x7a0] sm:$0xff] }
 0x109   :  { %1882 = vmatpush1.bf16.msra.mxu0 %v1881_v33  ;;  %v322_v33 = vld [vmem:[#allocation5 + $0x6a8] sm:$0xff] }
 0x10a   :  { %1884 = vmatprep.subr.bf16.mxu0 %v1883_v34  ;;  %v324_v34 = vld [vmem:[#allocation5 + $0x6b8] sm:$0xff] }
 0x10b   :  { %v1923_v37 = vpack.c.bf16 %v324_v34, %v322_v33  ;;  %v359_v33 = vld [vmem:[#allocation5 + $0x7d0] sm:$0xff]  ;;  %v362_v34 = vld [vmem:[#allocation5 + $0x7e8] sm:$0xff] }
 0x10d   :  { %1886 = vmatpush1.bf16.msra.mxu0 %v1885_v40  ;;  %v326_v40 = vld [vmem:[#allocation5 + $0x6c8] sm:$0xff] }
 0x10e   :  { %1888 = vmatprep.subr.bf16.mxu0 %v1887_v41  ;;  %v328_v41 = vld [vmem:[#allocation5 + $0x6d8] sm:$0xff] }
 0x10f   :  { %v1927_v43 = vpack.c.bf16 %v328_v41, %v326_v40  ;;  %v363_v40 = vld [vmem:[#allocation5 + $0x7f0] sm:$0xff] }
 0x110   :  { %v1965_v41 = vpack.c.bf16 %v363_v40, %v361_v39  ;;  %v885_v39 = vld [vmem:[#allocation10 + $0xc0] sm:$0xff]  ;;  %v887_v40 = vld [vmem:[#allocation10 + $0xd0] sm:$0xff] }
 0x111   :  { %1890 = vmatpush1.bf16.msra.mxu0 %v1889_v49  ;;  %v330_v49 = vld [vmem:[#allocation5 + $0x6e8] sm:$0xff] }
 0x112   :  { %1892 = vmatprep.subr.bf16.mxu0 %v1891_v50  ;;  %v332_v50 = vld [vmem:[#allocation5 + $0x6f8] sm:$0xff] }
 0x113   :  { %v1931_v52 = vpack.c.bf16 %v332_v50, %v330_v49  ;;  %v782_v49 = vld [vmem:[#allocation8 + $0xf8] sm:$0xff] }
 0x114   :  { %v1995_v50 = vpack.c.bf16 %v782_v49, %v781_v45  ;;  %v889_v45 = vld [vmem:[#allocation10 + $0xe0] sm:$0xff]  ;;  %v891_v49 = vld [vmem:[#allocation10 + $0xf0] sm:$0xff] }
 0x115   :  { %1894 = vmatpush1.bf16.msra.mxu0 %v1893_v57  ;;  %v334_v57 = vld [vmem:[#allocation5 + $0x708] sm:$0xff] }
 0x116   :  { %1896 = vmatprep.subr.bf16.mxu0 %v1895_v61  ;;  %v336_v61 = vld [vmem:[#allocation5 + $0x718] sm:$0xff] }
 0x117   :  { %v1935_v63 = vpack.c.bf16 %v336_v61, %v334_v57  ;;  %v864_v57 = vld [vmem:[#allocation10 + $0x18] sm:$0xff] }
 0x118   :  { %v1999_v61 = vpack.c.bf16 %v864_v57, %v862_v56  ;;  %v985_v57 = vld [vmem:[#allocation7 + $0x38] sm:$0xff] }
 0x119   :  { %1898 = vmatpush1.bf16.msra.mxu0 %v1897_v3  ;;  %v338_v3 = vld [vmem:[#allocation5 + $0x728] sm:$0xff] }
 0x11a   :  { %1900 = vmatprep.subr.bf16.mxu0 %v1899_v4  ;;  %v340_v4 = vld [vmem:[#allocation5 + $0x738] sm:$0xff] }
 0x11b   :  { %v1939_v6 = vpack.c.bf16 %v340_v4, %v338_v3  ;;  %v861_v4 = vld [vmem:[#allocation10] sm:$0xff] }
 0x11d   :  { %1902 = vmatpush1.bf16.msra.mxu0 %v1901_v9  ;;  %v342_v9 = vld [vmem:[#allocation5 + $0x748] sm:$0xff] }
 0x11e   :  { %1904 = vmatprep.subr.bf16.mxu0 %v1903_v54  ;;  %v344_v54 = vld [vmem:[#allocation5 + $0x758] sm:$0xff] }
 0x11f   :  { %v1943_v10 = vpack.c.bf16 %v344_v54, %v342_v9 }
 0x120   :  { %672 = vmatmul.mubr.f32.vlgmr.msra.gmra.mrb[0].mxu0 %v453_v15  ;;  %v317_v15 = vld [vmem:[#allocation5 + $0x680] sm:$0xff] }
 0x121   :  { %1906 = vmatpush1.bf16.msra.mxu0 %v1905_v1  ;;  %742 = vmatprep.mubr.f32.mxu0 %v456_v11  ;;  %v1921_v36 = vpack.c.bf16 %v319_v32, %v317_v15  ;;  %v346_v1 = vld [vmem:[#allocation5 + $0x768] sm:$0xff]  ;;  %v348_v11 = vld [vmem:[#allocation5 + $0x778] sm:$0xff]  ;;  %v357_v32 = vld [vmem:[#allocation5 + $0x7c0] sm:$0xff] }
 0x122   :  { %1908 = vmatprep.subr.bf16.mxu0 %v1907_v14  ;;  %v1945_v14 = vpack.c.bf16 %v343_v60, %v341_v59  ;;  %v1947_v16 = vpack.c.bf16 %v348_v11, %v346_v1  ;;  %v865_v59 = vld [vmem:[#allocation10 + $0x20] sm:$0xff]  ;;  %v867_v60 = vld [vmem:[#allocation10 + $0x30] sm:$0xff]  ;;  %v870_v1 = vld [vmem:[#allocation10 + $0x48] sm:$0xff] }
 0x123   :  { %v872_v11 = vld [vmem:[#allocation10 + $0x58] sm:$0xff] }
 0x125   :  { %1910 = vmatpush1.bf16.msra.mxu0 %v1909_v20  ;;  %v352_v20 = vld [vmem:[#allocation5 + $0x798] sm:$0xff] }
 0x126   :  { %1912 = vmatprep.subr.bf16.mxu0 %v1911_v21  ;;  %v1949_v21 = vpack.c.bf16 %v347_v18, %v345_v17  ;;  %v1951_v22 = vpack.c.bf16 %v352_v20, %v350_v19  ;;  %v869_v17 = vld [vmem:[#allocation10 + $0x40] sm:$0xff]  ;;  %v871_v18 = vld [vmem:[#allocation10 + $0x50] sm:$0xff]  ;;  %v874_v19 = vld [vmem:[#allocation10 + $0x68] sm:$0xff] }
 0x127   :  { %v876_v20 = vld [vmem:[#allocation10 + $0x78] sm:$0xff] }
 0x129   :  { %1914 = vmatpush1.bf16.msra.mxu0 %v1913_v26  ;;  %v356_v26 = vld [vmem:[#allocation5 + $0x7b8] sm:$0xff] }
 0x12a   :  { %1916 = vmatprep.subr.bf16.mxu0 %v1915_v27  ;;  %v1953_v27 = vpack.c.bf16 %v351_v24, %v349_v23  ;;  %v1955_v28 = vpack.c.bf16 %v356_v26, %v354_v25  ;;  %v873_v23 = vld [vmem:[#allocation10 + $0x60] sm:$0xff]  ;;  %v875_v24 = vld [vmem:[#allocation10 + $0x70] sm:$0xff]  ;;  %v878_v25 = vld [vmem:[#allocation10 + $0x88] sm:$0xff] }
 0x12b   :  { %v880_v26 = vld [vmem:[#allocation10 + $0x98] sm:$0xff] }
 0x12d   :  { %1918 = vmatpush1.bf16.msra.mxu0 %v1917_v12  ;;  %v360_v12 = vld [vmem:[#allocation5 + $0x7d8] sm:$0xff] }
 0x12e   :  { %1920 = vmatprep.subr.bf16.mxu0 %v1919_v13  ;;  %v1957_v13 = vpack.c.bf16 %v355_v30, %v353_v29  ;;  %v1959_v15 = vpack.c.bf16 %v360_v12, %v358_v31  ;;  %v877_v29 = vld [vmem:[#allocation10 + $0x80] sm:$0xff]  ;;  %v879_v30 = vld [vmem:[#allocation10 + $0x90] sm:$0xff]  ;;  %v882_v31 = vld [vmem:[#allocation10 + $0xa8] sm:$0xff] }
 0x12f   :  { %v884_v12 = vld [vmem:[#allocation10 + $0xb8] sm:$0xff] }
 0x131   :  { %1922 = vmatpush1.bf16.msra.mxu0 %v1921_v36  ;;  %v364_v36 = vld [vmem:[#allocation5 + $0x7f8] sm:$0xff] }
 0x132   :  { %1924 = vmatprep.subr.bf16.mxu0 %v1923_v37  ;;  %v1961_v37 = vpack.c.bf16 %v359_v33, %v357_v32  ;;  %v1963_v38 = vpack.c.bf16 %v364_v36, %v362_v34  ;;  %v881_v32 = vld [vmem:[#allocation10 + $0xa0] sm:$0xff]  ;;  %v883_v33 = vld [vmem:[#allocation10 + $0xb0] sm:$0xff]  ;;  %v886_v36 = vld [vmem:[#allocation10 + $0xc8] sm:$0xff] }
 0x133   :  { %v2021_v34 = vpack.c.bf16 %v883_v33, %v881_v32  ;;  %v1097_v33 = vld [vmem:[#allocation7 + $0x3b8] sm:$0xff] }
 0x135   :  { %1926 = vmatpush1.bf16.msra.mxu0 %v1925_v42  ;;  %v763_v42 = vld [vmem:[#allocation8 + $0x60] sm:$0xff] }
 0x136   :  { %1928 = vmatprep.subr.bf16.mxu0 %v1927_v43  ;;  %v764_v43 = vld [vmem:[#allocation8 + $0x68] sm:$0xff] }
 0x137   :  { %v1993_v44 = vpack.c.bf16 %v764_v43, %v763_v42  ;;  %v890_v42 = vld [vmem:[#allocation10 + $0xe8] sm:$0xff]  ;;  %v892_v43 = vld [vmem:[#allocation10 + $0xf8] sm:$0xff] }
 0x139   :  { %1930 = vmatpush1.bf16.msra.mxu0 %v1929_v51  ;;  %1994 = vmatpush3.bf16.msra.mxu1 %v1993_v44  ;;  %v765_v51 = vld [vmem:[#allocation8 + $0x70] sm:$0xff]  ;;  %v2027_v44 = vpack.c.bf16 %v892_v43, %v890_v42 }
 0x13a   :  { %1932 = vmatprep.subr.bf16.mxu0 %v1931_v52  ;;  %v766_v52 = vld [vmem:[#allocation8 + $0x78] sm:$0xff]  ;;  %1996 = vmatprep.subr.bf16.mxu1 %v1995_v50  ;;  %v2029_v50 = vpack.c.bf16 %v891_v49, %v889_v45  ;;  %v1112_v42 = vld [vmem:[#allocation7 + $0x430] sm:$0xff] }
 0x13b   :  { %v1997_v53 = vpack.c.bf16 %v766_v52, %v765_v51  ;;  %v2473_v51 = vmov 0.0   ;;  %v979_v52 = vld [vmem:[#allocation7 + $0x8] sm:$0xff]  ;;  %v1129_v49 = vld [vmem:[#allocation7 + $0x4b8] sm:$0xff] }
 0x13d   :  { %1934 = vmatpush1.bf16.msra.mxu0 %v1933_v62  ;;  %1998 = vmatpush3.bf16.msra.mxu1 %v1997_v53  ;;  %v2663_v62 = vsub.s32 0, %v2608_v35  ;;  %v987_v53 = vld [vmem:[#allocation7 + $0x48] sm:$0xff] }
 0x13e   :  { %1936 = vmatprep.subr.bf16.mxu0 %v1935_v63  ;;  %2000 = vmatprep.subr.bf16.mxu1 %v1999_v61  ;;  %v374_v63 = vrot.slane %v365_v47, %v2669_v48  ;;  %v2031_v56 = vpack.c.bf16 %v987_v53, %v979_v52  ;;  %v993_v61 = vld [vmem:[#allocation7 + $0x78] sm:$0xff]  ;;  %v1136_v53 = vld [vmem:[#allocation7 + $0x4f0] sm:$0xff] }
 0x141   :  { %1938 = vmatpush1.bf16.msra.mxu0 %v1937_v5  ;;  %v863_v5 = vld [vmem:[#allocation10 + $0x10] sm:$0xff] }
 0x142   :  { %1940 = vmatprep.subr.bf16.mxu0 %v1939_v6  ;;  %v2001_v54 = vpack.c.bf16 %v863_v5, %v861_v4  ;;  %v1000_v4 = vld [vmem:[#allocation7 + $0xb0] sm:$0xff] }
 0x145   :  { %1942 = vmatpush1.bf16.msra.mxu0 %v1941_v58 }
 0x146   :  { %1944 = vmatprep.subr.bf16.mxu0 %v1943_v10  ;;  %v2003_v10 = vpack.c.bf16 %v868_v8, %v866_v7  ;;  %v1017_v8 = vld [vmem:[#allocation7 + $0x138] sm:$0xff] }
 0x149   :  { %1946 = vmatpush1.bf16.msra.mxu0 %v1945_v14  ;;  %v2005_v14 = vpack.c.bf16 %v867_v60, %v865_v59  ;;  %v1033_v60 = vld [vmem:[#allocation7 + $0x1b8] sm:$0xff] }
 0x14a   :  { %1948 = vmatprep.subr.bf16.mxu0 %v1947_v16  ;;  %v2007_v16 = vpack.c.bf16 %v872_v11, %v870_v1  ;;  %v1041_v1 = vld [vmem:[#allocation7 + $0x1f8] sm:$0xff]  ;;  %v1032_v11 = vld [vmem:[#allocation7 + $0x1b0] sm:$0xff] }
 0x14d   :  { %1950 = vmatpush1.bf16.msra.mxu0 %v1949_v21  ;;  %v2009_v21 = vpack.c.bf16 %v871_v18, %v869_v17  ;;  %v1049_v18 = vld [vmem:[#allocation7 + $0x238] sm:$0xff] }
 0x14e   :  { %1952 = vmatprep.subr.bf16.mxu0 %v1951_v22  ;;  %v2011_v22 = vpack.c.bf16 %v876_v20, %v874_v19  ;;  %v1057_v19 = vld [vmem:[#allocation7 + $0x278] sm:$0xff]  ;;  %v1048_v20 = vld [vmem:[#allocation7 + $0x230] sm:$0xff] }
 0x151   :  { %1954 = vmatpush1.bf16.msra.mxu0 %v1953_v27  ;;  %v2013_v27 = vpack.c.bf16 %v875_v24, %v873_v23  ;;  %v1065_v24 = vld [vmem:[#allocation7 + $0x2b8] sm:$0xff] }
 0x152   :  { %1956 = vmatprep.subr.bf16.mxu0 %v1955_v28  ;;  %v2015_v28 = vpack.c.bf16 %v880_v26, %v878_v25  ;;  %v1073_v25 = vld [vmem:[#allocation7 + $0x2f8] sm:$0xff]  ;;  %v1064_v26 = vld [vmem:[#allocation7 + $0x2b0] sm:$0xff] }
 0x155   :  { %1958 = vmatpush1.bf16.msra.mxu0 %v1957_v13  ;;  %v2017_v13 = vpack.c.bf16 %v879_v30, %v877_v29  ;;  %v1081_v30 = vld [vmem:[#allocation7 + $0x338] sm:$0xff] }
 0x156   :  { %1960 = vmatprep.subr.bf16.mxu0 %v1959_v15  ;;  %v2019_v15 = vpack.c.bf16 %v884_v12, %v882_v31  ;;  %v1089_v31 = vld [vmem:[#allocation7 + $0x378] sm:$0xff]  ;;  %v1080_v12 = vld [vmem:[#allocation7 + $0x330] sm:$0xff] }
 0x159   :  { %1962 = vmatpush1.bf16.msra.mxu0 %v1961_v37  ;;  %v888_v37 = vld [vmem:[#allocation10 + $0xd8] sm:$0xff] }
 0x15a   :  { %1964 = vmatprep.subr.bf16.mxu0 %v1963_v38  ;;  %v2023_v38 = vpack.c.bf16 %v888_v37, %v886_v36  ;;  %v1096_v36 = vld [vmem:[#allocation7 + $0x3b0] sm:$0xff] }
 0x15d   :  { %1966 = vmatpush1.bf16.msra.mxu0 %v1965_v41  ;;  %v2025_v41 = vpack.c.bf16 %v887_v40, %v885_v39  ;;  %v1113_v40 = vld [vmem:[#allocation7 + $0x438] sm:$0xff] }
 0x160   :  { %743 = vmatmul.mubr.f32.vlgmr.msra.gmra.mrb[0].mxu0 %v455_v55  ;;  %v370_v55 = vrot.slane %v365_v47, %v2663_v62  ;;  %v2223_v47 = vpack.c.bf16 %v993_v61, %v985_v57  ;;  %v1145_v57 = vld [vmem:[#allocation7 + $0x538] sm:$0xff] }
 0x161   :  { %v1153_v61 = vld [vmem:[#allocation7 + $0x578] sm:$0xff] }
 0x162   :  { %2224 = vmatprep.subr.bf16.mxu0 %v2223_v47  ;;  %v1144_v47 = vld [vmem:[#allocation7 + $0x530] sm:$0xff] }
 0x233   :  { %v744_v0 = vpop.f32.mrb[0].mxu0 }
 0x234   :  { %v2287_v2 = vadd.f32 %v744_v0, %v370_v55  ;;  %v746_v3 = vpop.f32.mrb[1].mxu0  ;;  %v984_v55 = vld [vmem:[#allocation7 + $0x30] sm:$0xff] }
 0x235   :  { %v2288_v6 = vadd.f32 %v746_v3, %v374_v63  ;;  %v992_v63 = vld [vmem:[#allocation7 + $0x70] sm:$0xff]  ;;  %v1009_v3 = vld [vmem:[#allocation7 + $0xf8] sm:$0xff] }
 0x236   :  { %v749_v58 = vmax.f32 %v2287_v2, 0.0  ;;  %v2225_v0 = vpack.c.bf16 %v992_v63, %v984_v55  ;;  %v1001_v2 = vld [vmem:[#allocation7 + $0xb8] sm:$0xff]  ;;  %v2263_v55 = vpack.c.bf16 %v1153_v61, %v1145_v57  ;;  %v1152_v63 = vld [vmem:[#allocation7 + $0x570] sm:$0xff]  ;;  %v1067_v57 = vld [vmem:[#allocation7 + $0x2c8] sm:$0xff] }
 0x237   :  { %v750_v9 = vmax.f32 %v2288_v6, 0.0  ;;  %v2227_v5 = vpack.c.bf16 %v1009_v3, %v1001_v2  ;;  %v1008_v6 = vld [vmem:[#allocation7 + $0xf0] sm:$0xff]  ;;  %v1161_v2 = vld [vmem:[#allocation7 + $0x5b8] sm:$0xff] }
 0x238   :  { %2226 = vmatpush1.bf16.msra.mxu0 %v2225_v0  ;;  %v2229_v7 = vpack.c.bf16 %v1008_v6, %v1000_v4  ;;  %v2265_v0 = vpack.c.bf16 %v1152_v63, %v1144_v47  ;;  %v1169_v3 = vld [vmem:[#allocation7 + $0x5f8] sm:$0xff]  ;;  %v1160_v4 = vld [vmem:[#allocation7 + $0x5b0] sm:$0xff]  ;;  %v1066_v63 = vld [vmem:[#allocation7 + $0x2c0] sm:$0xff] }
 0x239   :  { %854 = vmatprep.mubr.f32.mxu1 %v750_v9  ;;  %2228 = vmatprep.subr.bf16.mxu0 %v2227_v5  ;;  %v1025_v9 = vld [vmem:[#allocation7 + $0x178] sm:$0xff]  ;;  %v2267_v5 = vpack.c.bf16 %v1169_v3, %v1161_v2  ;;  %v1168_v6 = vld [vmem:[#allocation7 + $0x5f0] sm:$0xff]  ;;  %v1083_v2 = vld [vmem:[#allocation7 + $0x348] sm:$0xff] }
 0x23a   :  { %855 = vmatmul.mubr.f32.vlgmr.msra.gmra.mrb[0].mxu1 %v749_v58  ;;  %v2231_v58 = vpack.c.bf16 %v1025_v9, %v1017_v8  ;;  %v1177_v8 = vld [vmem:[#allocation7 + $0x638] sm:$0xff] }
 0x23b   :  { %2002 = vmatpush1.bf16.msra.mxu1 %v2001_v54  ;;  %969 = vmatprep.mubr.f32.mxu1 %v2473_v51  ;;  %v1016_v54 = vld [vmem:[#allocation7 + $0x130] sm:$0xff]  ;;  %v1185_v9 = vld [vmem:[#allocation7 + $0x678] sm:$0xff] }
 0x23c   :  { %2004 = vmatprep.subr.bf16.mxu1 %v2003_v10  ;;  %2230 = vmatpush1.bf16.msra.mxu0 %v2229_v7  ;;  %v1024_v10 = vld [vmem:[#allocation7 + $0x170] sm:$0xff]  ;;  %v2269_v7 = vpack.c.bf16 %v1168_v6, %v1160_v4  ;;  %v1082_v6 = vld [vmem:[#allocation7 + $0x340] sm:$0xff] }
 0x23d   :  { %v2233_v59 = vpack.c.bf16 %v1024_v10, %v1016_v54  ;;  %2232 = vmatprep.subr.bf16.mxu0 %v2231_v58  ;;  %v1128_v51 = vld [vmem:[#allocation7 + $0x4b0] sm:$0xff]  ;;  %v2271_v58 = vpack.c.bf16 %v1185_v9, %v1177_v8  ;;  %v1099_v8 = vld [vmem:[#allocation7 + $0x3c8] sm:$0xff] }
 0x23e   :  { %v1176_v54 = vld [vmem:[#allocation7 + $0x630] sm:$0xff] }
 0x23f   :  { %2006 = vmatpush1.bf16.msra.mxu1 %v2005_v14  ;;  %v2235_v14 = vpack.c.bf16 %v1041_v1, %v1033_v60  ;;  %v1184_v10 = vld [vmem:[#allocation7 + $0x670] sm:$0xff]  ;;  %v1193_v60 = vld [vmem:[#allocation7 + $0x6b8] sm:$0xff] }
 0x240   :  { %2008 = vmatprep.subr.bf16.mxu1 %v2007_v16  ;;  %2234 = vmatpush1.bf16.msra.mxu0 %v2233_v59  ;;  %v1040_v16 = vld [vmem:[#allocation7 + $0x1f0] sm:$0xff]  ;;  %v2273_v59 = vpack.c.bf16 %v1184_v10, %v1176_v54  ;;  %v1201_v1 = vld [vmem:[#allocation7 + $0x6f8] sm:$0xff]  ;;  %v1098_v10 = vld [vmem:[#allocation7 + $0x3c0] sm:$0xff] }
 0x241   :  { %v2237_v17 = vpack.c.bf16 %v1040_v16, %v1032_v11  ;;  %2236 = vmatprep.subr.bf16.mxu0 %v2235_v14  ;;  %v1192_v11 = vld [vmem:[#allocation7 + $0x6b0] sm:$0xff]  ;;  %v2275_v14 = vpack.c.bf16 %v1201_v1, %v1193_v60  ;;  %v1115_v60 = vld [vmem:[#allocation7 + $0x448] sm:$0xff] }
 0x242   :  { %v1200_v16 = vld [vmem:[#allocation7 + $0x6f0] sm:$0xff] }
 0x243   :  { %2010 = vmatpush1.bf16.msra.mxu1 %v2009_v21  ;;  %v2239_v21 = vpack.c.bf16 %v1057_v19, %v1049_v18  ;;  %v1209_v18 = vld [vmem:[#allocation7 + $0x738] sm:$0xff] }
 0x244   :  { %2012 = vmatprep.subr.bf16.mxu1 %v2011_v22  ;;  %2238 = vmatpush1.bf16.msra.mxu0 %v2237_v17  ;;  %v1056_v22 = vld [vmem:[#allocation7 + $0x270] sm:$0xff]  ;;  %v2277_v17 = vpack.c.bf16 %v1200_v16, %v1192_v11  ;;  %v1217_v19 = vld [vmem:[#allocation7 + $0x778] sm:$0xff]  ;;  %v1114_v16 = vld [vmem:[#allocation7 + $0x440] sm:$0xff] }
 0x245   :  { %v2241_v23 = vpack.c.bf16 %v1056_v22, %v1048_v20  ;;  %2240 = vmatprep.subr.bf16.mxu0 %v2239_v21  ;;  %v2279_v20 = vpack.c.bf16 %v1217_v19, %v1209_v18  ;;  %v1675_v22 = vld [vmem:[%s2733_s6] ss:$0 sm:$0xff]  ;;  %v1131_v18 = vld [vmem:[#allocation7 + $0x4c8] sm:$0xff] }
 0x247   :  { %2014 = vmatpush1.bf16.msra.mxu1 %v2013_v27  ;;  %v2243_v27 = vpack.c.bf16 %v1073_v25, %v1065_v24  ;;  %v978_v25 = vld [vmem:[#allocation7] sm:$0xff] }
 0x248   :  { %2016 = vmatprep.subr.bf16.mxu1 %v2015_v28  ;;  %2242 = vmatpush1.bf16.msra.mxu0 %v2241_v23  ;;  %v1072_v28 = vld [vmem:[#allocation7 + $0x2f0] sm:$0xff] }
 0x249   :  { %v2245_v29 = vpack.c.bf16 %v1072_v28, %v1064_v26  ;;  %2244 = vmatprep.subr.bf16.mxu0 %v2243_v27  ;;  %v986_v26 = vld [vmem:[#allocation7 + $0x40] sm:$0xff]  ;;  %v995_v27 = vld [vmem:[#allocation7 + $0x88] sm:$0xff] }
 0x24a   :  { %v1003_v28 = vld [vmem:[#allocation7 + $0xc8] sm:$0xff] }
 0x24b   :  { %2018 = vmatpush1.bf16.msra.mxu1 %v2017_v13  ;;  %v2247_v13 = vpack.c.bf16 %v1089_v31, %v1081_v30  ;;  %v2033_v30 = vpack.c.bf16 %v986_v26, %v978_v25 }
 0x24c   :  { %2020 = vmatprep.subr.bf16.mxu1 %v2019_v15  ;;  %2246 = vmatpush1.bf16.msra.mxu0 %v2245_v29  ;;  %v1088_v15 = vld [vmem:[#allocation7 + $0x370] sm:$0xff] }
 0x24d   :  { %v2249_v32 = vpack.c.bf16 %v1088_v15, %v1080_v12  ;;  %2248 = vmatprep.subr.bf16.mxu0 %v2247_v13  ;;  %v2035_v12 = vpack.c.bf16 %v1003_v28, %v995_v27  ;;  %v994_v13 = vld [vmem:[#allocation7 + $0x80] sm:$0xff] }
 0x24e   :  { %v1002_v15 = vld [vmem:[#allocation7 + $0xc0] sm:$0xff] }
 0x24f   :  { %2022 = vmatpush1.bf16.msra.mxu1 %v2021_v34  ;;  %v1105_v34 = vld [vmem:[#allocation7 + $0x3f8] sm:$0xff]  ;;  %v1138_v27 = vld [vmem:[#allocation7 + $0x500] sm:$0xff] }
 0x250   :  { %2024 = vmatprep.subr.bf16.mxu1 %v2023_v38  ;;  %2250 = vmatpush1.bf16.msra.mxu0 %v2249_v32  ;;  %v2251_v37 = vpack.c.bf16 %v1105_v34, %v1097_v33  ;;  %v1104_v38 = vld [vmem:[#allocation7 + $0x3f0] sm:$0xff]  ;;  %v1011_v32 = vld [vmem:[#allocation7 + $0x108] sm:$0xff]  ;;  %v2037_v34 = vpack.c.bf16 %v1002_v15, %v994_v13  ;;  %v1146_v28 = vld [vmem:[#allocation7 + $0x540] sm:$0xff] }
 0x251   :  { %v2253_v39 = vpack.c.bf16 %v1104_v38, %v1096_v36  ;;  %v1019_v33 = vld [vmem:[#allocation7 + $0x148] sm:$0xff]  ;;  %v1018_v38 = vld [vmem:[#allocation7 + $0x140] sm:$0xff] }
 0x252   :  { %2252 = vmatprep.subr.bf16.mxu0 %v2251_v37  ;;  %v2039_v36 = vpack.c.bf16 %v1019_v33, %v1011_v32  ;;  %v1010_v37 = vld [vmem:[#allocation7 + $0x100] sm:$0xff]  ;;  %v1171_v32 = vld [vmem:[#allocation7 + $0x608] sm:$0xff] }
 0x253   :  { %2026 = vmatpush1.bf16.msra.mxu1 %v2025_v41  ;;  %v1121_v41 = vld [vmem:[#allocation7 + $0x478] sm:$0xff]  ;;  %v1154_v13 = vld [vmem:[#allocation7 + $0x580] sm:$0xff]  ;;  %v1179_v33 = vld [vmem:[#allocation7 + $0x648] sm:$0xff] }
 0x254   :  { %2028 = vmatprep.subr.bf16.mxu1 %v2027_v44  ;;  %2254 = vmatpush1.bf16.msra.mxu0 %v2253_v39  ;;  %v2255_v43 = vpack.c.bf16 %v1121_v41, %v1113_v40  ;;  %v1120_v44 = vld [vmem:[#allocation7 + $0x470] sm:$0xff]  ;;  %v1027_v39 = vld [vmem:[#allocation7 + $0x188] sm:$0xff]  ;;  %v2041_v41 = vpack.c.bf16 %v1018_v38, %v1010_v37  ;;  %v1162_v15 = vld [vmem:[#allocation7 + $0x5c0] sm:$0xff] }
 0x255   :  { %v2257_v45 = vpack.c.bf16 %v1120_v44, %v1112_v42  ;;  %v1035_v40 = vld [vmem:[#allocation7 + $0x1c8] sm:$0xff]  ;;  %v1034_v44 = vld [vmem:[#allocation7 + $0x1c0] sm:$0xff] }
 0x256   :  { %2256 = vmatprep.subr.bf16.mxu0 %v2255_v43  ;;  %v2043_v42 = vpack.c.bf16 %v1035_v40, %v1027_v39  ;;  %v1026_v43 = vld [vmem:[#allocation7 + $0x180] sm:$0xff]  ;;  %v1187_v39 = vld [vmem:[#allocation7 + $0x688] sm:$0xff] }
 0x257   :  { %2030 = vmatpush1.bf16.msra.mxu1 %v2029_v50  ;;  %v1137_v50 = vld [vmem:[#allocation7 + $0x4f8] sm:$0xff]  ;;  %v1170_v37 = vld [vmem:[#allocation7 + $0x600] sm:$0xff]  ;;  %v1195_v40 = vld [vmem:[#allocation7 + $0x6c8] sm:$0xff] }
 0x258   :  { %2032 = vmatprep.subr.bf16.mxu1 %v2031_v56  ;;  %2258 = vmatpush1.bf16.msra.mxu0 %v2257_v45  ;;  %v2259_v52 = vpack.c.bf16 %v1137_v50, %v1129_v49  ;;  %v2261_v56 = vpack.c.bf16 %v1136_v53, %v1128_v51  ;;  %v1043_v45 = vld [vmem:[#allocation7 + $0x208] sm:$0xff]  ;;  %v2045_v50 = vpack.c.bf16 %v1034_v44, %v1026_v43  ;;  %v1050_v53 = vld [vmem:[#allocation7 + $0x240] sm:$0xff] }
 0x259   :  { %v1051_v49 = vld [vmem:[#allocation7 + $0x248] sm:$0xff]  ;;  %v1178_v38 = vld [vmem:[#allocation7 + $0x640] sm:$0xff] }
 0x25a   :  { %2260 = vmatprep.subr.bf16.mxu0 %v2259_v52  ;;  %v2047_v51 = vpack.c.bf16 %v1051_v49, %v1043_v45  ;;  %v1042_v52 = vld [vmem:[#allocation7 + $0x200] sm:$0xff]  ;;  %v1203_v45 = vld [vmem:[#allocation7 + $0x708] sm:$0xff] }
 0x25b   :  { %v2049_v61 = vpack.c.bf16 %v1050_v53, %v1042_v52  ;;  %v1186_v43 = vld [vmem:[#allocation7 + $0x680] sm:$0xff]  ;;  %v1211_v49 = vld [vmem:[#allocation7 + $0x748] sm:$0xff] }
 0x25c   :  { %2262 = vmatpush1.bf16.msra.mxu0 %v2261_v56  ;;  %v1059_v56 = vld [vmem:[#allocation7 + $0x288] sm:$0xff]  ;;  %v1194_v44 = vld [vmem:[#allocation7 + $0x6c0] sm:$0xff] }
 0x25d   :  { %2264 = vmatprep.subr.bf16.mxu0 %v2263_v55  ;;  %v2051_v47 = vpack.c.bf16 %v1067_v57, %v1059_v56  ;;  %v1058_v55 = vld [vmem:[#allocation7 + $0x280] sm:$0xff]  ;;  %v1208_v57 = vld [vmem:[#allocation7 + $0x730] sm:$0xff] }
 0x25e   :  { %v2053_v3 = vpack.c.bf16 %v1066_v63, %v1058_v55  ;;  %v1202_v52 = vld [vmem:[#allocation7 + $0x700] sm:$0xff]  ;;  %v1219_v55 = vld [vmem:[#allocation7 + $0x788] sm:$0xff] }
 0x25f   :  { %v1210_v53 = vld [vmem:[#allocation7 + $0x740] sm:$0xff]  ;;  %v1227_v63 = vld [vmem:[#allocation7 + $0x7c8] sm:$0xff] }
 0x260   :  { %2266 = vmatpush1.bf16.msra.mxu0 %v2265_v0  ;;  %v1075_v0 = vld [vmem:[#allocation7 + $0x308] sm:$0xff]  ;;  %v2089_v56 = vpack.c.bf16 %v1210_v53, %v1202_v52  ;;  %v1060_v52 = vld [vmem:[#allocation7 + $0x290] sm:$0xff] }
 0x261   :  { %2268 = vmatprep.subr.bf16.mxu0 %v2267_v5  ;;  %v2055_v4 = vpack.c.bf16 %v1083_v2, %v1075_v0  ;;  %v1074_v5 = vld [vmem:[#allocation7 + $0x300] sm:$0xff]  ;;  %v2091_v0 = vpack.c.bf16 %v1227_v63, %v1219_v55  ;;  %v1068_v53 = vld [vmem:[#allocation7 + $0x2d0] sm:$0xff] }
 0x262   :  { %v2057_v9 = vpack.c.bf16 %v1082_v6, %v1074_v5  ;;  %v1218_v2 = vld [vmem:[#allocation7 + $0x780] sm:$0xff]  ;;  %v1233_v6 = vld [vmem:[#allocation7 + $0x7f8] sm:$0xff]  ;;  %v1076_v55 = vld [vmem:[#allocation7 + $0x310] sm:$0xff] }
 0x263   :  { %v1084_v63 = vld [vmem:[#allocation7 + $0x350] sm:$0xff] }
 0x264   :  { %2270 = vmatpush1.bf16.msra.mxu0 %v2269_v7  ;;  %v1091_v7 = vld [vmem:[#allocation7 + $0x388] sm:$0xff] }
 0x265   :  { %2272 = vmatprep.subr.bf16.mxu0 %v2271_v58  ;;  %v2059_v54 = vpack.c.bf16 %v1099_v8, %v1091_v7  ;;  %v1090_v58 = vld [vmem:[#allocation7 + $0x380] sm:$0xff]  ;;  %v1224_v7 = vld [vmem:[#allocation7 + $0x7b0] sm:$0xff] }
 0x266   :  { %v2061_v1 = vpack.c.bf16 %v1098_v10, %v1090_v58  ;;  %v1232_v8 = vld [vmem:[#allocation7 + $0x7f0] sm:$0xff]  ;;  %v981_v58 = vld [vmem:[#allocation7 + $0x18] sm:$0xff] }
 0x267   :  { %v989_v10 = vld [vmem:[#allocation7 + $0x58] sm:$0xff] }
 0x268   :  { %2274 = vmatpush1.bf16.msra.mxu0 %v2273_v59  ;;  %v1107_v59 = vld [vmem:[#allocation7 + $0x408] sm:$0xff] }
 0x269   :  { %2276 = vmatprep.subr.bf16.mxu0 %v2275_v14  ;;  %v2063_v11 = vpack.c.bf16 %v1115_v60, %v1107_v59  ;;  %v1106_v14 = vld [vmem:[#allocation7 + $0x400] sm:$0xff]  ;;  %v2095_v59 = vpack.c.bf16 %v989_v10, %v981_v58  ;;  %v1108_v58 = vld [vmem:[#allocation7 + $0x410] sm:$0xff] }
 0x26a   :  { %v2065_v19 = vpack.c.bf16 %v1114_v16, %v1106_v14  ;;  %v893_v60 = vld [vmem:[%s2734_s7] sm:$0x3]  ;;  %v1116_v10 = vld [vmem:[#allocation7 + $0x450] sm:$0xff] }
 0x26c   :  { %2278 = vmatpush1.bf16.msra.mxu0 %v2277_v17  ;;  %v1123_v17 = vld [vmem:[#allocation7 + $0x488] sm:$0xff] }
 0x26d   :  { %2280 = vmatprep.subr.bf16.mxu0 %v2279_v20  ;;  %v2067_v20 = vpack.c.bf16 %v1131_v18, %v1123_v17  ;;  %v980_v18 = vld [vmem:[#allocation7 + $0x10] sm:$0xff] }
 0x30d   :  { %v1708_v21 = vpop.f32.mrb[0].mxu1 }
 0x30e   :  { %v1709_v23 = vpop.f32.mrb[1].mxu1 }
 0x30f   :  { %v1710_v24 = vadd.f32 %v1709_v23, %v1708_v21  ;;  %v1122_v21 = vld [vmem:[#allocation7 + $0x480] sm:$0xff]  ;;  %v1139_v23 = vld [vmem:[#allocation7 + $0x508] sm:$0xff] }
 0x311   :  { %v857_v29 = vadd.f32 %v1710_v24, %v1675_v22  ;;  %v1130_v22 = vld [vmem:[#allocation7 + $0x4c0] sm:$0xff]  ;;  %v1147_v24 = vld [vmem:[#allocation7 + $0x548] sm:$0xff] }
 0x312   :  { %v2069_v25 = vpack.c.bf16 %v1130_v22, %v1122_v21  ;;  %v2071_v26 = vpack.c.bf16 %v1147_v24, %v1139_v23  ;;  %v997_v21 = vld [vmem:[#allocation7 + $0x98] sm:$0xff] }
 0x313   :  { %v860_v31 = vmax.f32 %v857_v29, 0.0  ;;  %v1155_v29 = vld [vmem:[#allocation7 + $0x588] sm:$0xff]  ;;  %v1005_v22 = vld [vmem:[#allocation7 + $0xd8] sm:$0xff] }
 0x315   :  { %970 = vmatmul.mubr.f32.vlgmr.msra.gmra.mrb[2].mxu1 %v860_v31  ;;  %v2073_v31 = vpack.c.bf16 %v1146_v28, %v1138_v27  ;;  %v996_v27 = vld [vmem:[#allocation7 + $0x90] sm:$0xff] }
 0x316   :  { %2034 = vmatpush1.bf16.msra.mxu1 %v2033_v30  ;;  %v1163_v30 = vld [vmem:[#allocation7 + $0x5c8] sm:$0xff]  ;;  %v1004_v28 = vld [vmem:[#allocation7 + $0xd0] sm:$0xff] }
 0x317   :  { %2036 = vmatprep.subr.bf16.mxu1 %v2035_v12  ;;  %v2075_v12 = vpack.c.bf16 %v1163_v30, %v1155_v29  ;;  %v1013_v29 = vld [vmem:[#allocation7 + $0x118] sm:$0xff] }
 0x318   :  { %v1021_v30 = vld [vmem:[#allocation7 + $0x158] sm:$0xff] }
 0x31a   :  { %2038 = vmatpush1.bf16.msra.mxu1 %v2037_v34  ;;  %v2077_v34 = vpack.c.bf16 %v1162_v15, %v1154_v13  ;;  %v1012_v13 = vld [vmem:[#allocation7 + $0x110] sm:$0xff] }
 0x31b   :  { %2040 = vmatprep.subr.bf16.mxu1 %v2039_v36  ;;  %v2079_v36 = vpack.c.bf16 %v1179_v33, %v1171_v32  ;;  %v1020_v15 = vld [vmem:[#allocation7 + $0x150] sm:$0xff]  ;;  %v1029_v32 = vld [vmem:[#allocation7 + $0x198] sm:$0xff] }
 0x31c   :  { %v1037_v33 = vld [vmem:[#allocation7 + $0x1d8] sm:$0xff] }
 0x31e   :  { %2042 = vmatpush1.bf16.msra.mxu1 %v2041_v41  ;;  %v2081_v41 = vpack.c.bf16 %v1178_v38, %v1170_v37  ;;  %v1028_v37 = vld [vmem:[#allocation7 + $0x190] sm:$0xff] }
 0x31f   :  { %2044 = vmatprep.subr.bf16.mxu1 %v2043_v42  ;;  %v2083_v42 = vpack.c.bf16 %v1195_v40, %v1187_v39  ;;  %v1036_v38 = vld [vmem:[#allocation7 + $0x1d0] sm:$0xff]  ;;  %v1045_v39 = vld [vmem:[#allocation7 + $0x218] sm:$0xff] }
 0x320   :  { %v1053_v40 = vld [vmem:[#allocation7 + $0x258] sm:$0xff] }
 0x322   :  { %2046 = vmatpush1.bf16.msra.mxu1 %v2045_v50  ;;  %v2085_v50 = vpack.c.bf16 %v1194_v44, %v1186_v43  ;;  %v1044_v43 = vld [vmem:[#allocation7 + $0x210] sm:$0xff] }
 0x323   :  { %2048 = vmatprep.subr.bf16.mxu1 %v2047_v51  ;;  %v2087_v51 = vpack.c.bf16 %v1211_v49, %v1203_v45  ;;  %v1052_v44 = vld [vmem:[#allocation7 + $0x250] sm:$0xff]  ;;  %v1061_v45 = vld [vmem:[#allocation7 + $0x298] sm:$0xff] }
 0x324   :  { %v1069_v49 = vld [vmem:[#allocation7 + $0x2d8] sm:$0xff] }
 0x326   :  { %2050 = vmatpush1.bf16.msra.mxu1 %v2049_v61  ;;  %v1216_v61 = vld [vmem:[#allocation7 + $0x770] sm:$0xff] }
 0x327   :  { %2052 = vmatprep.subr.bf16.mxu1 %v2051_v47  ;;  %v2281_v47 = vpack.c.bf16 %v1216_v61, %v1208_v57  ;;  %v1085_v57 = vld [vmem:[#allocation7 + $0x358] sm:$0xff]  ;;  %v2117_v61 = vpack.c.bf16 %v1068_v53, %v1060_v52 }
 0x329   :  { %2282 = vmatpush1.bf16.msra.mxu0 %v2281_v47 }
 0x32a   :  { %2054 = vmatpush1.bf16.msra.mxu1 %v2053_v3  ;;  %v1226_v3 = vld [vmem:[#allocation7 + $0x7c0] sm:$0xff] }
 0x32b   :  { %2056 = vmatprep.subr.bf16.mxu1 %v2055_v4  ;;  %v1225_v4 = vld [vmem:[#allocation7 + $0x7b8] sm:$0xff]  ;;  %v2093_v5 = vpack.c.bf16 %v1226_v3, %v1218_v2  ;;  %v2121_v3 = vpack.c.bf16 %v1084_v63, %v1076_v55 }
 0x32c   :  { %v1101_v2 = vld [vmem:[#allocation7 + $0x3d8] sm:$0xff] }
 0x32e   :  { %2058 = vmatpush1.bf16.msra.mxu1 %v2057_v9  ;;  %v2283_v9 = vpack.c.bf16 %v1233_v6, %v1225_v4  ;;  %v1100_v6 = vld [vmem:[#allocation7 + $0x3d0] sm:$0xff] }
 0x32f   :  { %2060 = vmatprep.subr.bf16.mxu1 %v2059_v54  ;;  %v2285_v54 = vpack.c.bf16 %v1232_v8, %v1224_v7  ;;  %v1109_v7 = vld [vmem:[#allocation7 + $0x418] sm:$0xff] }
 0x330   :  { %2284 = vmatprep.subr.bf16.mxu0 %v2283_v9  ;;  %v1117_v8 = vld [vmem:[#allocation7 + $0x458] sm:$0xff] }
 0x331   :  { %2286 = vmatpush1.bf16.msra.mxu0 %v2285_v54  ;;  %v2127_v54 = vpack.c.bf16 %v1117_v8, %v1109_v7  ;;  %v998_v7 = vld [vmem:[#allocation7 + $0xa0] sm:$0xff] }
 0x332   :  { %2062 = vmatpush1.bf16.msra.mxu1 %v2061_v1  ;;  %v898_v1 = vrot.slane %v893_v60, %v2663_v62  ;;  %v1006_v8 = vld [vmem:[#allocation7 + $0xe0] sm:$0xff] }
 0x333   :  { %2064 = vmatprep.subr.bf16.mxu1 %v2063_v11  ;;  %v902_v11 = vrot.slane %v893_v60, %v2669_v48  ;;  %v1133_v60 = vld [vmem:[#allocation7 + $0x4d8] sm:$0xff] }
 0x336   :  { %2066 = vmatpush1.bf16.msra.mxu1 %v2065_v19  ;;  %v988_v19 = vld [vmem:[#allocation7 + $0x50] sm:$0xff] }
 0x337   :  { %2068 = vmatprep.subr.bf16.mxu1 %v2067_v20  ;;  %v2097_v24 = vpack.c.bf16 %v988_v19, %v980_v18  ;;  %v1149_v18 = vld [vmem:[#allocation7 + $0x558] sm:$0xff] }
 0x33a   :  { %2070 = vmatpush1.bf16.msra.mxu1 %v2069_v25 }
 0x33b   :  { %2072 = vmatprep.subr.bf16.mxu1 %v2071_v26  ;;  %v2099_v26 = vpack.c.bf16 %v1005_v22, %v997_v21  ;;  %v1140_v21 = vld [vmem:[#allocation7 + $0x510] sm:$0xff] }
 0x33c   :  { %v1148_v22 = vld [vmem:[#allocation7 + $0x550] sm:$0xff] }
 0x33e   :  { %2074 = vmatpush1.bf16.msra.mxu1 %v2073_v31  ;;  %v2101_v31 = vpack.c.bf16 %v1004_v28, %v996_v27  ;;  %v2137_v27 = vpack.c.bf16 %v1148_v22, %v1140_v21 }
 0x33f   :  { %2076 = vmatprep.subr.bf16.mxu1 %v2075_v12  ;;  %v2103_v12 = vpack.c.bf16 %v1021_v30, %v1013_v29  ;;  %v1156_v29 = vld [vmem:[#allocation7 + $0x590] sm:$0xff] }
 0x340   :  { %v1164_v30 = vld [vmem:[#allocation7 + $0x5d0] sm:$0xff] }
 0x342   :  { %2078 = vmatpush1.bf16.msra.mxu1 %v2077_v34  ;;  %v2105_v34 = vpack.c.bf16 %v1020_v15, %v1012_v13  ;;  %v2141_v13 = vpack.c.bf16 %v1164_v30, %v1156_v29  ;;  %v1062_v30 = vld [vmem:[#allocation7 + $0x2a0] sm:$0xff] }
 0x343   :  { %2080 = vmatprep.subr.bf16.mxu1 %v2079_v36  ;;  %v2107_v36 = vpack.c.bf16 %v1037_v33, %v1029_v32  ;;  %v1172_v32 = vld [vmem:[#allocation7 + $0x610] sm:$0xff] }
 0x344   :  { %v1180_v33 = vld [vmem:[#allocation7 + $0x650] sm:$0xff] }
 0x346   :  { %2082 = vmatpush1.bf16.msra.mxu1 %v2081_v41  ;;  %v2109_v41 = vpack.c.bf16 %v1036_v38, %v1028_v37  ;;  %v2145_v37 = vpack.c.bf16 %v1180_v33, %v1172_v32  ;;  %v1078_v33 = vld [vmem:[#allocation7 + $0x320] sm:$0xff] }
 0x347   :  { %2084 = vmatprep.subr.bf16.mxu1 %v2083_v42  ;;  %v2111_v42 = vpack.c.bf16 %v1053_v40, %v1045_v39  ;;  %v1188_v39 = vld [vmem:[#allocation7 + $0x690] sm:$0xff] }
 0x348   :  { %v1196_v40 = vld [vmem:[#allocation7 + $0x6d0] sm:$0xff] }
 0x34a   :  { %2086 = vmatpush1.bf16.msra.mxu1 %v2085_v50  ;;  %v2113_v50 = vpack.c.bf16 %v1052_v44, %v1044_v43  ;;  %v2149_v43 = vpack.c.bf16 %v1196_v40, %v1188_v39  ;;  %v1094_v40 = vld [vmem:[#allocation7 + $0x3a0] sm:$0xff] }
 0x34b   :  { %2088 = vmatprep.subr.bf16.mxu1 %v2087_v51  ;;  %v2115_v51 = vpack.c.bf16 %v1069_v49, %v1061_v45  ;;  %v1204_v45 = vld [vmem:[#allocation7 + $0x710] sm:$0xff] }
 0x34c   :  { %v1212_v49 = vld [vmem:[#allocation7 + $0x750] sm:$0xff] }
 0x34d   :  { %v2153_v52 = vpack.c.bf16 %v1212_v49, %v1204_v45  ;;  %v1110_v49 = vld [vmem:[#allocation7 + $0x420] sm:$0xff] }
 0x34e   :  { %2090 = vmatpush1.bf16.msra.mxu1 %v2089_v56  ;;  %v1077_v56 = vld [vmem:[#allocation7 + $0x318] sm:$0xff] }
 0x34f   :  { %2092 = vmatprep.subr.bf16.mxu1 %v2091_v0  ;;  %v2119_v47 = vpack.c.bf16 %v1085_v57, %v1077_v56  ;;  %v1093_v0 = vld [vmem:[#allocation7 + $0x398] sm:$0xff]  ;;  %v1220_v56 = vld [vmem:[#allocation7 + $0x790] sm:$0xff] }
 0x350   :  { %v2123_v4 = vpack.c.bf16 %v1101_v2, %v1093_v0  ;;  %v1228_v57 = vld [vmem:[#allocation7 + $0x7d0] sm:$0xff]  ;;  %v982_v0 = vld [vmem:[#allocation7 + $0x20] sm:$0xff] }
 0x351   :  { %v2157_v55 = vpack.c.bf16 %v1228_v57, %v1220_v56  ;;  %v990_v2 = vld [vmem:[#allocation7 + $0x60] sm:$0xff] }
 0x352   :  { %2094 = vmatpush1.bf16.msra.mxu1 %v2093_v5  ;;  %v1092_v5 = vld [vmem:[#allocation7 + $0x390] sm:$0xff]  ;;  %v1126_v57 = vld [vmem:[#allocation7 + $0x4a0] sm:$0xff] }
 0x353   :  { %2096 = vmatprep.subr.bf16.mxu1 %v2095_v59  ;;  %v2125_v9 = vpack.c.bf16 %v1100_v6, %v1092_v5  ;;  %v1125_v59 = vld [vmem:[#allocation7 + $0x498] sm:$0xff]  ;;  %v2161_v5 = vpack.c.bf16 %v990_v2, %v982_v0  ;;  %v1142_v2 = vld [vmem:[#allocation7 + $0x520] sm:$0xff] }
 0x3e8   :  { %v971_v14 = vpop.f32.mrb[2].mxu1 }
 0x3e9   :  { %v972_v16 = vadd.f32 %v971_v14, %v898_v1  ;;  %v973_v17 = vpop.f32.mrb[3].mxu1  ;;  %v2129_v1 = vpack.c.bf16 %v1116_v10, %v1108_v58  ;;  %v1124_v14 = vld [vmem:[#allocation7 + $0x490] sm:$0xff]  ;;  %v2165_v58 = vpack.c.bf16 %v1006_v8, %v998_v7  ;;  %v1158_v8 = vld [vmem:[#allocation7 + $0x5a0] sm:$0xff] }
 0x3ea   :  { %v974_v20 = vadd.f32 %v973_v17, %v902_v11  ;;  %v2131_v11 = vpack.c.bf16 %v1133_v60, %v1125_v59  ;;  %v1141_v17 = vld [vmem:[#allocation7 + $0x518] sm:$0xff]  ;;  %v1014_v59 = vld [vmem:[#allocation7 + $0x120] sm:$0xff] }
 0x3eb   :  { %v2683_v25 = vmax.f32 %v972_v16, 0.0  ;;  %v1132_v16 = vld [vmem:[#allocation7 + $0x4d0] sm:$0xff]  ;;  %v1022_v60 = vld [vmem:[#allocation7 + $0x160] sm:$0xff] }
 0x3ec   :  { %v2681_v23 = vmax.f32 %v974_v20, 0.0  ;;  %v2133_v19 = vpack.c.bf16 %v1132_v16, %v1124_v14  ;;  %v2135_v20 = vpack.c.bf16 %v1149_v18, %v1141_v17  ;;  %v2169_v14 = vpack.c.bf16 %v1022_v60, %v1014_v59  ;;  %v1030_v17 = vld [vmem:[#allocation7 + $0x1a0] sm:$0xff] }
 0x3ed   :  { %v1038_v18 = vld [vmem:[#allocation7 + $0x1e0] sm:$0xff] }
 0x3ee   :  { %1340 = vmatprep.mubr.f32.mxu1 %v2681_v23  ;;  %1553 = vmatprep.mubr.f32.mxu0 %v2681_v23  ;;  %v2173_v21 = vpack.c.bf16 %v1038_v18, %v1030_v17  ;;  %v1174_v60 = vld [vmem:[#allocation7 + $0x620] sm:$0xff] }
 0x3ef   :  { %1341 = vmatmul.mubr.f32.vlgmr.msra.gmra.mrb[4].mxu1 %v2683_v25  ;;  %1554 = vmatmul.mubr.f32.vlgmr.msra.gmra.mrb[2].mxu0 %v2683_v25  ;;  %v1190_v18 = vld [vmem:[#allocation7 + $0x6a0] sm:$0xff] }
 0x3f0   :  { %2098 = vmatpush1.bf16.msra.mxu1 %v2097_v24  ;;  %1411 = vmatprep.mubr.f32.mxu1 %v2681_v23  ;;  %v1157_v24 = vld [vmem:[#allocation7 + $0x598] sm:$0xff] }
 0x3f1   :  { %2100 = vmatprep.subr.bf16.mxu1 %v2099_v26  ;;  %v1165_v26 = vld [vmem:[#allocation7 + $0x5d8] sm:$0xff] }
 0x3f2   :  { %v2139_v28 = vpack.c.bf16 %v1165_v26, %v1157_v24  ;;  %v1054_v24 = vld [vmem:[#allocation7 + $0x260] sm:$0xff]  ;;  %v1063_v26 = vld [vmem:[#allocation7 + $0x2a8] sm:$0xff] }
 0x3f4   :  { %2102 = vmatpush1.bf16.msra.mxu1 %v2101_v31  ;;  %v1173_v31 = vld [vmem:[#allocation7 + $0x618] sm:$0xff] }
 0x3f5   :  { %2104 = vmatprep.subr.bf16.mxu1 %v2103_v12  ;;  %v1181_v12 = vld [vmem:[#allocation7 + $0x658] sm:$0xff] }
 0x3f6   :  { %v2143_v15 = vpack.c.bf16 %v1181_v12, %v1173_v31  ;;  %v1070_v31 = vld [vmem:[#allocation7 + $0x2e0] sm:$0xff]  ;;  %v1079_v12 = vld [vmem:[#allocation7 + $0x328] sm:$0xff] }
 0x3f8   :  { %2106 = vmatpush1.bf16.msra.mxu1 %v2105_v34  ;;  %v1189_v34 = vld [vmem:[#allocation7 + $0x698] sm:$0xff] }
 0x3f9   :  { %2108 = vmatprep.subr.bf16.mxu1 %v2107_v36  ;;  %v1197_v36 = vld [vmem:[#allocation7 + $0x6d8] sm:$0xff] }
 0x3fa   :  { %v2147_v38 = vpack.c.bf16 %v1197_v36, %v1189_v34  ;;  %v1086_v34 = vld [vmem:[#allocation7 + $0x360] sm:$0xff]  ;;  %v1095_v36 = vld [vmem:[#allocation7 + $0x3a8] sm:$0xff] }
 0x3fc   :  { %2110 = vmatpush1.bf16.msra.mxu1 %v2109_v41  ;;  %v1205_v41 = vld [vmem:[#allocation7 + $0x718] sm:$0xff] }
 0x3fd   :  { %2112 = vmatprep.subr.bf16.mxu1 %v2111_v42  ;;  %v1213_v42 = vld [vmem:[#allocation7 + $0x758] sm:$0xff] }
 0x3fe   :  { %v2151_v44 = vpack.c.bf16 %v1213_v42, %v1205_v41  ;;  %v1102_v41 = vld [vmem:[#allocation7 + $0x3e0] sm:$0xff]  ;;  %v1111_v42 = vld [vmem:[#allocation7 + $0x428] sm:$0xff] }
 0x400   :  { %2114 = vmatpush1.bf16.msra.mxu1 %v2113_v50  ;;  %v1221_v50 = vld [vmem:[#allocation7 + $0x798] sm:$0xff] }
 0x401   :  { %2116 = vmatprep.subr.bf16.mxu1 %v2115_v51  ;;  %v1229_v51 = vld [vmem:[#allocation7 + $0x7d8] sm:$0xff] }
 0x402   :  { %v2155_v53 = vpack.c.bf16 %v1229_v51, %v1221_v50  ;;  %v1118_v50 = vld [vmem:[#allocation7 + $0x460] sm:$0xff]  ;;  %v1127_v51 = vld [vmem:[#allocation7 + $0x4a8] sm:$0xff] }
 0x404   :  { %2118 = vmatpush1.bf16.msra.mxu1 %v2117_v61  ;;  %v983_v61 = vld [vmem:[#allocation7 + $0x28] sm:$0xff] }
 0x405   :  { %2120 = vmatprep.subr.bf16.mxu1 %v2119_v47  ;;  %v991_v47 = vld [vmem:[#allocation7 + $0x68] sm:$0xff] }
 0x406   :  { %v2159_v63 = vpack.c.bf16 %v991_v47, %v983_v61  ;;  %v1134_v61 = vld [vmem:[#allocation7 + $0x4e0] sm:$0xff]  ;;  %v1143_v47 = vld [vmem:[#allocation7 + $0x528] sm:$0xff] }
 0x408   :  { %2122 = vmatpush1.bf16.msra.mxu1 %v2121_v3  ;;  %v999_v3 = vld [vmem:[#allocation7 + $0xa8] sm:$0xff] }
 0x409   :  { %2124 = vmatprep.subr.bf16.mxu1 %v2123_v4  ;;  %v1007_v4 = vld [vmem:[#allocation7 + $0xe8] sm:$0xff] }
 0x40a   :  { %v2163_v6 = vpack.c.bf16 %v1007_v4, %v999_v3  ;;  %v1150_v3 = vld [vmem:[#allocation7 + $0x560] sm:$0xff]  ;;  %v1159_v4 = vld [vmem:[#allocation7 + $0x5a8] sm:$0xff] }
 0x40c   :  { %2126 = vmatpush1.bf16.msra.mxu1 %v2125_v9  ;;  %v1015_v9 = vld [vmem:[#allocation7 + $0x128] sm:$0xff] }
 0x40d   :  { %2128 = vmatprep.subr.bf16.mxu1 %v2127_v54  ;;  %v1023_v54 = vld [vmem:[#allocation7 + $0x168] sm:$0xff] }
 0x40e   :  { %v2167_v10 = vpack.c.bf16 %v1023_v54, %v1015_v9  ;;  %v1166_v9 = vld [vmem:[#allocation7 + $0x5e0] sm:$0xff]  ;;  %v1175_v54 = vld [vmem:[#allocation7 + $0x628] sm:$0xff] }
 0x410   :  { %2130 = vmatpush1.bf16.msra.mxu1 %v2129_v1  ;;  %v1031_v1 = vld [vmem:[#allocation7 + $0x1a8] sm:$0xff] }
 0x411   :  { %2132 = vmatprep.subr.bf16.mxu1 %v2131_v11  ;;  %v1039_v11 = vld [vmem:[#allocation7 + $0x1e8] sm:$0xff] }
 0x412   :  { %v2171_v16 = vpack.c.bf16 %v1039_v11, %v1031_v1  ;;  %v1182_v1 = vld [vmem:[#allocation7 + $0x660] sm:$0xff]  ;;  %v1191_v11 = vld [vmem:[#allocation7 + $0x6a8] sm:$0xff] }
 0x414   :  { %2134 = vmatpush1.bf16.msra.mxu1 %v2133_v19  ;;  %v1047_v19 = vld [vmem:[#allocation7 + $0x228] sm:$0xff] }
 0x415   :  { %2136 = vmatprep.subr.bf16.mxu1 %v2135_v20  ;;  %v1055_v20 = vld [vmem:[#allocation7 + $0x268] sm:$0xff] }
 0x416   :  { %v2175_v22 = vpack.c.bf16 %v1055_v20, %v1047_v19  ;;  %v1198_v19 = vld [vmem:[#allocation7 + $0x6e0] sm:$0xff]  ;;  %v1207_v20 = vld [vmem:[#allocation7 + $0x728] sm:$0xff] }
 0x418   :  { %2138 = vmatpush1.bf16.msra.mxu1 %v2137_v27  ;;  %v1071_v27 = vld [vmem:[#allocation7 + $0x2e8] sm:$0xff] }
 0x419   :  { %2140 = vmatprep.subr.bf16.mxu1 %v2139_v28  ;;  %v2179_v29 = vpack.c.bf16 %v1071_v27, %v1063_v26  ;;  %v1214_v26 = vld [vmem:[#allocation7 + $0x760] sm:$0xff]  ;;  %v1223_v27 = vld [vmem:[#allocation7 + $0x7a8] sm:$0xff] }
 0x41c   :  { %2142 = vmatpush1.bf16.msra.mxu1 %v2141_v13  ;;  %v1087_v13 = vld [vmem:[#allocation7 + $0x368] sm:$0xff] }
 0x41d   :  { %2144 = vmatprep.subr.bf16.mxu1 %v2143_v15  ;;  %v2181_v15 = vpack.c.bf16 %v1070_v31, %v1062_v30  ;;  %v2183_v32 = vpack.c.bf16 %v1087_v13, %v1079_v12  ;;  %v1222_v31 = vld [vmem:[#allocation7 + $0x7a0] sm:$0xff] }
 0x41e   :  { %v1230_v12 = vld [vmem:[#allocation7 + $0x7e0] sm:$0xff] }
 0x41f   :  { %v2221_v13 = vpack.c.bf16 %v1230_v12, %v1222_v31 }
 0x420   :  { %2146 = vmatpush1.bf16.msra.mxu1 %v2145_v37  ;;  %v1103_v37 = vld [vmem:[#allocation7 + $0x3e8] sm:$0xff] }
 0x421   :  { %2148 = vmatprep.subr.bf16.mxu1 %v2147_v38  ;;  %v2185_v38 = vpack.c.bf16 %v1086_v34, %v1078_v33  ;;  %v2187_v39 = vpack.c.bf16 %v1103_v37, %v1095_v36  ;;  %v1266_v33 = vsub.s32 7, %v2608_v35 }
 0x424   :  { %2150 = vmatpush1.bf16.msra.mxu1 %v2149_v43  ;;  %v1119_v43 = vld [vmem:[#allocation7 + $0x468] sm:$0xff] }
 0x425   :  { %2152 = vmatprep.subr.bf16.mxu1 %v2151_v44  ;;  %v2189_v44 = vpack.c.bf16 %v1102_v41, %v1094_v40  ;;  %v2191_v45 = vpack.c.bf16 %v1119_v43, %v1111_v42 }
 0x428   :  { %2154 = vmatpush1.bf16.msra.mxu1 %v2153_v52  ;;  %v1135_v52 = vld [vmem:[#allocation7 + $0x4e8] sm:$0xff] }
 0x429   :  { %2156 = vmatprep.subr.bf16.mxu1 %v2155_v53  ;;  %v2193_v53 = vpack.c.bf16 %v1118_v50, %v1110_v49  ;;  %v2195_v56 = vpack.c.bf16 %v1135_v52, %v1127_v51 }
 0x42c   :  { %2158 = vmatpush1.bf16.msra.mxu1 %v2157_v55  ;;  %v1151_v55 = vld [vmem:[#allocation7 + $0x568] sm:$0xff] }
 0x42d   :  { %2160 = vmatprep.subr.bf16.mxu1 %v2159_v63  ;;  %v2197_v63 = vpack.c.bf16 %v1134_v61, %v1126_v57  ;;  %v2199_v0 = vpack.c.bf16 %v1151_v55, %v1143_v47 }
 0x42f   :  { %1412 = vmatmul.mubr.f32.vlgmr.msra.gmra.mrb[6].mxu1 %v2683_v25 }
 0x430   :  { %2162 = vmatpush1.bf16.msra.mxu1 %v2161_v5  ;;  %1482 = vmatprep.mubr.f32.mxu1 %v2681_v23  ;;  %v1046_v23 = vld [vmem:[#allocation7 + $0x220] sm:$0xff]  ;;  %v1167_v5 = vld [vmem:[#allocation7 + $0x5e8] sm:$0xff] }
 0x431   :  { %2164 = vmatprep.subr.bf16.mxu1 %v2163_v6  ;;  %v2177_v28 = vpack.c.bf16 %v1054_v24, %v1046_v23  ;;  %v2201_v6 = vpack.c.bf16 %v1150_v3, %v1142_v2  ;;  %v2203_v7 = vpack.c.bf16 %v1167_v5, %v1159_v4  ;;  %v1206_v24 = vld [vmem:[#allocation7 + $0x720] sm:$0xff] }
 0x434   :  { %2166 = vmatpush1.bf16.msra.mxu1 %v2165_v58  ;;  %v1183_v58 = vld [vmem:[#allocation7 + $0x668] sm:$0xff] }
 0x435   :  { %2168 = vmatprep.subr.bf16.mxu1 %v2167_v10  ;;  %v2205_v10 = vpack.c.bf16 %v1166_v9, %v1158_v8  ;;  %v2207_v59 = vpack.c.bf16 %v1183_v58, %v1175_v54  ;;  %v1254_v54 = vsub.s32 4, %v2608_v35  ;;  %v1258_v58 = vsub.s32 5, %v2608_v35 }
 0x438   :  { %2170 = vmatpush1.bf16.msra.mxu1 %v2169_v14  ;;  %v1199_v14 = vld [vmem:[#allocation7 + $0x6e8] sm:$0xff] }
 0x439   :  { %2172 = vmatprep.subr.bf16.mxu1 %v2171_v16  ;;  %v2209_v16 = vpack.c.bf16 %v1182_v1, %v1174_v60  ;;  %v2211_v17 = vpack.c.bf16 %v1199_v14, %v1191_v11 }
 0x43c   :  { %2174 = vmatpush1.bf16.msra.mxu1 %v2173_v21  ;;  %v1215_v21 = vld [vmem:[#allocation7 + $0x768] sm:$0xff] }
 0x43d   :  { %2176 = vmatprep.subr.bf16.mxu1 %v2175_v22  ;;  %v2213_v22 = vpack.c.bf16 %v1198_v19, %v1190_v18  ;;  %v2215_v23 = vpack.c.bf16 %v1215_v21, %v1207_v20 }
 0x440   :  { %2178 = vmatpush1.bf16.msra.mxu1 %v2177_v28  ;;  %v1231_v28 = vld [vmem:[#allocation7 + $0x7e8] sm:$0xff] }
 0x441   :  { %2180 = vmatprep.subr.bf16.mxu1 %v2179_v29  ;;  %v2217_v29 = vpack.c.bf16 %v1214_v26, %v1206_v24  ;;  %v2219_v30 = vpack.c.bf16 %v1231_v28, %v1223_v27 }
 0x444   :  { %2182 = vmatpush1.bf16.msra.mxu1 %v2181_v15  ;;  %v1262_v15 = vsub.s32 6, %v2608_v35 }
 0x445   :  { %2184 = vmatprep.subr.bf16.mxu1 %v2183_v32  ;;  %v1234_v32 = vld [vmem:[%s2735_s8] sm:$0xff] }
 0x446   :  { %v1239_v34 = vrot.slane %v1234_v32, %v2663_v62  ;;  %v1263_v36 = vrot.slane %v1234_v32, %v1262_v15  ;;  %v1243_v37 = vrot.slane %v1234_v32, %v2669_v48  ;;  %v1250_v62 = vsub.s32 3, %v2608_v35 }
 0x448   :  { %2186 = vmatpush1.bf16.msra.mxu1 %v2185_v38  ;;  %v1267_v38 = vrot.slane %v1234_v32, %v1266_v33  ;;  %v1251_v57 = vrot.slane %v1234_v32, %v1250_v62 }
 0x449   :  { %2188 = vmatprep.subr.bf16.mxu1 %v2187_v39 }
 0x44c   :  { %2190 = vmatpush1.bf16.msra.mxu1 %v2189_v44 }
 0x44d   :  { %2192 = vmatprep.subr.bf16.mxu1 %v2191_v45 }
 0x450   :  { %2194 = vmatpush1.bf16.msra.mxu1 %v2193_v53  ;;  %v1246_v53 = vsub.s32 2, %v2608_v35 }
 0x451   :  { %2196 = vmatprep.subr.bf16.mxu1 %v2195_v56 }
 0x452   :  { %v1247_v56 = vrot.slane %v1234_v32, %v1246_v53 }
 0x454   :  { %2198 = vmatpush1.bf16.msra.mxu1 %v2197_v63 }
 0x455   :  { %2200 = vmatprep.subr.bf16.mxu1 %v2199_v0 }
 0x458   :  { %2202 = vmatpush1.bf16.msra.mxu1 %v2201_v6 }
 0x459   :  { %2204 = vmatprep.subr.bf16.mxu1 %v2203_v7 }
 0x45c   :  { %2206 = vmatpush1.bf16.msra.mxu1 %v2205_v10  ;;  %v1255_v10 = vrot.slane %v1234_v32, %v1254_v54 }
 0x45d   :  { %2208 = vmatprep.subr.bf16.mxu1 %v2207_v59  ;;  %v1259_v59 = vrot.slane %v1234_v32, %v1258_v58 }
 0x460   :  { %2210 = vmatpush1.bf16.msra.mxu1 %v2209_v16 }
 0x461   :  { %2212 = vmatprep.subr.bf16.mxu1 %v2211_v17 }
 0x464   :  { %2214 = vmatpush1.bf16.msra.mxu1 %v2213_v22 }
 0x465   :  { %2216 = vmatprep.subr.bf16.mxu1 %v2215_v23 }
 0x468   :  { %2218 = vmatpush1.bf16.msra.mxu1 %v2217_v29 }
 0x469   :  { %2220 = vmatprep.subr.bf16.mxu1 %v2219_v30 }
 0x46c   :  { %2222 = vmatpush1.bf16.msra.mxu1 %v2221_v13 }
 0x46f   :  { %1483 = vmatmul.mubr.f32.vlgmr.msra.gmra.mrb[8].mxu1 %v2683_v25 }
 0x4c2   :  { %v1342_v39 = vpop.f32.mrb[4].mxu1  ;;  %v1555_v40 = vpop.f32.mrb[2].mxu0 }
 0x4c3   :  { %v1343_v41 = vadd.f32 %v1342_v39, %v1239_v34  ;;  %v1556_v42 = vadd.f32 %v1555_v40, %v1263_v36  ;;  %v1344_v43 = vpop.f32.mrb[5].mxu1  ;;  %v1557_v25 = vpop.f32.mrb[3].mxu0 }
 0x4c4   :  { %v1345_v44 = vadd.f32 %v1344_v43, %v1243_v37  ;;  %v1558_v45 = vadd.f32 %v1557_v25, %v1267_v38 }
 0x4c6   :  { %v1568_v49 = vcombine.low %v1343_v41, %v1345_v44  ;;  %v1569_v50 = vcombine.high %v1343_v41, %v1345_v44  ;;  %v1606_v51 = vcombine.low %v1556_v42, %v1558_v45  ;;  %v1607_v52 = vcombine.high %v1556_v42, %v1558_v45 }
 0x4c8   :  { %v1578_v2 = vrot.slane %v1568_v49, %v2611_v46  ;;  %v1585_v3 = vrot.slane %v1569_v50, %v2611_v46  ;;  %v1628_v18 = vrot.slane %v1606_v51, %v2611_v46  ;;  %v1635_v19 = vrot.slane %v1607_v52, %v2611_v46 }
 0x502   :  { %v1413_v48 = vpop.f32.mrb[6].mxu1 }
 0x503   :  { %v1414_v61 = vadd.f32 %v1413_v48, %v1247_v56  ;;  %v1415_v47 = vpop.f32.mrb[7].mxu1 }
 0x504   :  { %v1416_v55 = vadd.f32 %v1415_v47, %v1251_v57 }
 0x506   :  { %v1570_v63 = vcombine.low %v1414_v61, %v1416_v55  ;;  %v1571_v0 = vcombine.high %v1414_v61, %v1416_v55 }
 0x508   :  { %v1592_v4 = vrot.slane %v1570_v63, %v2611_v46  ;;  %v1599_v5 = vrot.slane %v1571_v0, %v2611_v46 }
 0x50a   :  { %v1600_v6 = vcombine.low %v1578_v2, %v1592_v4  ;;  %v1601_v7 = vcombine.high %v1578_v2, %v1592_v4  ;;  %v1602_v8 = vcombine.low %v1585_v3, %v1599_v5  ;;  %v1603_v9 = vcombine.high %v1585_v3, %v1599_v5 }
 0x50c   :  { %1648 = vst [vmem:[#allocation11] sm:$0xff] %v1600_v6  ;;  %1650 = vst [vmem:[#allocation11 + $0x10] sm:$0xff] %v1601_v7 }
 0x50d   :  { %1652 = vst [vmem:[#allocation11 + $0x20] sm:$0xff] %v1602_v8  ;;  %1654 = vst [vmem:[#allocation11 + $0x30] sm:$0xff] %v1603_v9 }
 0x542   :  { %v1484_v60 = vpop.f32.mrb[8].mxu1 }
 0x543   :  { %v1485_v1 = vadd.f32 %v1484_v60, %v1255_v10  ;;  %v1486_v11 = vpop.f32.mrb[9].mxu1 }
 0x544   :  { %v1487_v14 = vadd.f32 %v1486_v11, %v1259_v59 }
 0x546   :  { %v1604_v16 = vcombine.low %v1485_v1, %v1487_v14  ;;  %v1605_v17 = vcombine.high %v1485_v1, %v1487_v14 }
 0x548   :  { %v1614_v20 = vrot.slane %v1604_v16, %v2611_v46  ;;  %v1621_v21 = vrot.slane %v1605_v17, %v2611_v46 }
 0x54a   :  { %v1636_v22 = vcombine.low %v1614_v20, %v1628_v18  ;;  %v1637_v23 = vcombine.high %v1614_v20, %v1628_v18  ;;  %v1638_v24 = vcombine.low %v1621_v21, %v1635_v19  ;;  %v1639_v35 = vcombine.high %v1621_v21, %v1635_v19 }
 0x54c   :  { %1649 = vst [vmem:[#allocation11 + $0x8] sm:$0xff] %v1636_v22  ;;  %1651 = vst [vmem:[#allocation11 + $0x18] sm:$0xff] %v1637_v23 }
 0x54d   :  { %1653 = vst [vmem:[#allocation11 + $0x28] sm:$0xff] %v1638_v24  ;;  %1655 = vst [vmem:[#allocation11 + $0x38] sm:$0xff] %v1639_v35 }
 0x54e   :  { %1660 = vsyncadd [#allocation4], 768  ;;  %s2474_s8 = smov [#allocation11]  }
 0x54f   :  { %s1661_s15 = sshll.u32 %s2474_s8, 4  ;;  %s1662_s15 = int_to_ptr.vmem [resolvable:$true] %s1661_s15 }
 0x550   :  { %s2431_s16 = scalar_lea.vmem %s1662_s15, 256  ;;  %s2435_s18 = scalar_lea.vmem %s1662_s15, 1024 }
 0x551   :  { %p2432_p12 = scmp.ne.s32.totalorder %s1662_s15, %s2431_s16  ;;  %p2436_p13 = scmp.lt.s32.totalorder %s1662_s15, %s1662_s15 }
 0x552   :  { %p2437_p0 = scmp.lt.s32.totalorder %s2435_s18, %s2431_s16 }
 0x554   :  { %p2438_p1 = por %p2437_p0, %p2436_p13 }
 0x556   :  { %p2439_p2 = pnand %p2438_p1, %p2432_p12 }
 0x558   :  { %2442 = shalt.err (!%p2439_p2)
}
 0x559   :  { %s2443_s20 = scalar_lea.hbm %s2736_s9, 256 }
 0x55a   :  { %p2444_p3 = scmp.ne.s32.totalorder %s2736_s9, %s2443_s20  ;;  %p2447_p4 = scmp.lt.u32.totalorder %s2443_s20, %s2736_s9 }
 0x55c   :  { %p2449_p5 = pnand %p2447_p4, %p2444_p3 }
 0x55e   :  { %2452 = shalt.err (!%p2449_p5)
}
 0x55f   :  { %1667 = dma.vmem_to_hbm [thread:$0]  %s1662_s15, 256, %s2736_s9, [#allocation4], %s2463_s21, %s2463_s21, %s2464_s22  }
 0x560   :  { %2459 = dma.done.wait [#allocation4], 1024  }
 0x561   :  { %2460 = vsyncadd [#allocation4], 4294966272 }
 0x562   :  { %1671 = vsyncpa [#allocation3], 1 }
 0x563   :  { %1672 = vsyncpa [#allocation6], 1 }
 0x564   :  { %1673 = vsyncpa [#allocation9], 1 }
 0x565   :  { %1674 = vsyncpa [#allocation4], 1 }

</bundles_post_ra>
